<compile_context>
chip_gen: v5e
topology: v5e:2x2
jax: 0.10.0
libtpu: 0.0.40
codegen_flags: <defaults>
</compile_context>

<pallas_src>
import functools

import jax
import jax.numpy as jnp
from jax.experimental import pallas as pl
from jax.experimental.pallas import tpu as pltpu


def _layer_norm(x, w, b, eps=1e-5):
    mu = jnp.mean(x, axis=-1, keepdims=True)
    xc = x - mu
    var = jnp.mean(xc * xc, axis=-1, keepdims=True)
    inv = jax.lax.rsqrt(var + eps)
    return xc * inv * w + b


def _gelu_exact(x):
    # torch.nn.functional.gelu default (erf-based, not tanh approximation)
    return 0.5 * x * (1.0 + jax.lax.erf(x * 0.7071067811865476))


def transformer_block_kernel(
    x_q_ref, x_kv_ref,
    ln_w_ref, ln_b_ref,
    q_w_ref, q_b_ref, k_w_ref, k_b_ref, v_w_ref, v_b_ref,
    o_w_ref, o_b_ref,
    fln_w_ref, fln_b_ref,
    ff1_w_ref, ff1_b_ref, ff2_w_ref, ff2_b_ref,
    out_ref,
    k_cache, v_cache,
    *, num_heads, layer_norm_first,
):
    # x_q : this grid step's (TQ, H) row tile (queries / residual / FFN rows), f32.
    # x_kv: the full (T, H) sequence for this batch element, bf16 (K/V only).
    # k_cache / v_cache: persistent bf16 head-major caches (n_kb, nh, tk, hd),
    #                    filled once per batch element at query-tile index 0.
    n_kb, nh, tk, hd = k_cache.shape
    x_q = x_q_ref[0].astype(jnp.float32)
    TQ, H = x_q.shape

    # Hoist parameter loads once per grid step (LN params / biases stay f32).
    ln_w, ln_b = ln_w_ref[0], ln_b_ref[0]
    fln_w, fln_b = fln_w_ref[0], fln_b_ref[0]
    q_b, k_b, v_b, o_b = q_b_ref[0], k_b_ref[0], v_b_ref[0], o_b_ref[0]
    ff1_b, ff2_b = ff1_b_ref[0], ff2_b_ref[0]

    # ---- Build the K/V cache once per batch element (query-tile index 0). ----
    @pl.when(pl.program_id(1) == 0)
    def _build_kv_cache():
        x_kv = x_kv_ref[0]                                    # (T, H) bf16
        if layer_norm_first:
            a_kv = _layer_norm(x_kv.astype(jnp.float32), ln_w, ln_b
                               ).astype(jnp.bfloat16)
        else:
            a_kv = x_kv
        k = jnp.dot(a_kv, k_w_ref[...], preferred_element_type=jnp.float32) + k_b
        v = jnp.dot(a_kv, v_w_ref[...], preferred_element_type=jnp.float32) + v_b
        # Head-major, key-blocked layout so the flash loop indexes the leading dim.
        k_cache[...] = (k.astype(jnp.bfloat16)
                        .reshape(n_kb, tk, nh, hd).transpose(0, 2, 1, 3))
        v_cache[...] = (v.astype(jnp.bfloat16)
                        .reshape(n_kb, tk, nh, hd).transpose(0, 2, 1, 3))

    residual = x_q
    a_q = _layer_norm(x_q, ln_w, ln_b) if layer_norm_first else x_q

    # --- Self-attention (bf16 MXU inputs, f32 accumulation). ---
    # 1/sqrt(hd) is pre-folded into q_w/q_b at parameter-prep time.
    q = jnp.dot(a_q.astype(jnp.bfloat16), q_w_ref[...],
                preferred_element_type=jnp.float32) + q_b
    qh = q.astype(jnp.bfloat16).reshape(TQ, nh, hd).transpose(1, 0, 2)  # (nh,TQ,hd)

    # TODO(synk): attention_mask (additive mask) not plumbed through; forward is
    # only valid for the attention_mask=None path.
    if n_kb == 1:
        # Single key block: plain (numerically-stable) softmax, no running stats.
        kh = k_cache[0]
        vh = v_cache[0]
        s = jnp.einsum("hqd,hkd->hqk", qh, kh,
                       preferred_element_type=jnp.float32)     # (nh, TQ, tk)
        s = s - jnp.max(s, axis=-1, keepdims=True)
        p = jnp.exp(s)
        l = jnp.sum(p, axis=-1, keepdims=True)
        ctx = jnp.einsum("hqk,hkd->hqd", p.astype(jnp.bfloat16), vh,
                         preferred_element_type=jnp.float32)
    else:
        # Flash-style online softmax over key blocks — bounds the live score
        # tensor to (nh, TQ, tk) instead of (nh, TQ, T).
        def body(kb, carry):
            m, l, acc = carry
            kh = k_cache[kb]                                   # (nh, tk, hd) bf16
            vh = v_cache[kb]
            s = jnp.einsum("hqd,hkd->hqk", qh, kh,
                           preferred_element_type=jnp.float32)
            m_new = jnp.maximum(m, jnp.max(s, axis=-1, keepdims=True))
            alpha = jnp.exp(m - m_new)
            p = jnp.exp(s - m_new)
            l = alpha * l + jnp.sum(p, axis=-1, keepdims=True)
            acc = alpha * acc + jnp.einsum(
                "hqk,hkd->hqd", p.astype(jnp.bfloat16), vh,
                preferred_element_type=jnp.float32)
            return m_new, l, acc

        m0 = jnp.full((nh, TQ, 1), -jnp.inf, jnp.float32)
        l0 = jnp.zeros((nh, TQ, 1), jnp.float32)
        acc0 = jnp.zeros((nh, TQ, hd), jnp.float32)
        _, l, ctx = jax.lax.fori_loop(0, n_kb, body, (m0, l0, acc0))

    ctx = ctx * pl.reciprocal(l, approx=True)                  # EUP, not VALU div
    attn = ctx.transpose(1, 0, 2).reshape(TQ, H)
    attn = jnp.dot(attn.astype(jnp.bfloat16), o_w_ref[...],
                   preferred_element_type=jnp.float32) + o_b

    # dropout(p) is identity in eval mode
    x = residual + attn

    def feed_forward(y):
        h1 = jnp.dot(y.astype(jnp.bfloat16), ff1_w_ref[...],
                     preferred_element_type=jnp.float32) + ff1_b
        h1 = _gelu_exact(h1)
        # intermediate/output dropout are identity in eval mode
        return jnp.dot(h1.astype(jnp.bfloat16), ff2_w_ref[...],
                       preferred_element_type=jnp.float32) + ff2_b

    if layer_norm_first:
        x = x + feed_forward(_layer_norm(x, fln_w, fln_b))
    else:
        x = _layer_norm(x, ln_w, ln_b)
        x = _layer_norm(x + feed_forward(x), fln_w, fln_b)

    out_ref[0] = x.astype(out_ref.dtype)


def prepare_params(params, *, num_heads):
    """One-time parameter prep: fold q scaling, cast matmul weights to bf16."""
    H = params["q_w"].shape[0]
    assert H % num_heads == 0, "hidden_channels must be divisible by num_heads"
    scaling = float(H // num_heads) ** -0.5
    prepared = dict(params)
    prepared["q_w"] = params["q_w"] * scaling
    prepared["q_b"] = params["q_b"] * scaling
    # MXU-native bf16 weight storage (halves HBM->VMEM weight traffic + footprint);
    # LN params and biases remain f32 (elementwise math stays f32).
    for name in ("q_w", "k_w", "v_w", "o_w", "ff1_w", "ff2_w"):
        prepared[name] = prepared[name].astype(jnp.bfloat16)
    return prepared


def _default_vmem_limit_bytes():
    """Generation-aware VMEM request: ~100 MiB on v5e/v6e, ~56 MiB on v7x."""
    cap = 128 * 1024 * 1024
    try:
        cap = int(getattr(pltpu.get_tpu_info(), "vmem_capacity_bytes", cap))
    except Exception:
        pass
    return max(32 * 1024 * 1024, min(cap - 8 * 1024 * 1024, 100 * 1024 * 1024))


def _pick_tile(total, target):
    """Largest divisor of `total` that is <= target and a multiple of 8 (else total)."""
    t = min(target, total)
    if t >= total:
        return total
    for cand in range(t - t % 8, 0, -8):
        if total % cand == 0:
            return cand
    return total


def _weight_spec(shape):
    # Grid-invariant parameter: fetched once; single-buffered so Pallas does not
    # allocate a useless second VMEM copy (default pipelining double-buffers).
    try:
        return pl.BlockSpec(shape, lambda b, t: (0, 0), pipeline_mode=pl.Buffered(1))
    except TypeError:  # older Pallas without pipeline_mode kwarg
        return pl.BlockSpec(shape, lambda b, t: (0, 0))


def transformer_block(x, params, *, num_heads, layer_norm_first,
                      tq=None, tk=None, vmem_limit_bytes=None, out_dtype=None):
    B, T, H = x.shape
    assert H % num_heads == 0, "hidden_channels must be divisible by num_heads"
    hd = H // num_heads
    E = params["ff1_w"].shape[1]

    if vmem_limit_bytes is None:
        vmem_limit_bytes = _default_vmem_limit_bytes()
    # Derive the query tile from the VMEM budget (bigger tiles amortize the
    # per-grid-step overhead; smaller on v7x's 64 MiB VMEM).
    if tq is None:
        tq = 512 if vmem_limit_bytes >= 96 * 1024 * 1024 else 256
    if tk is None:
        tk = 512
    tq = _pick_tile(T, tq)
    tk = _pick_tile(T, tk)
    n_tq = T // tq
    n_kb = T // tk
    assert T % tq == 0 and T % tk == 0

    # Full-sequence K/V view fed in bf16: halves the per-batch-element DMA.
    x_kv = x.astype(jnp.bfloat16)

    kernel = functools.partial(
        transformer_block_kernel,
        num_heads=num_heads,
        layer_norm_first=layer_norm_first,
    )

    in_specs = [
        pl.BlockSpec((1, tq, H), lambda b, t: (b, t, 0)),   # x: query/residual/FFN tile (f32)
        pl.BlockSpec((1, T, H), lambda b, t: (b, 0, 0)),    # x: full sequence for K/V (bf16)
        _weight_spec((1, H)), _weight_spec((1, H)),         # layer_norm w, b
        _weight_spec((H, H)), _weight_spec((1, H)),         # q proj (scaling folded in)
        _weight_spec((H, H)), _weight_spec((1, H)),         # k proj
        _weight_spec((H, H)), _weight_spec((1, H)),         # v proj
        _weight_spec((H, H)), _weight_spec((1, H)),         # out proj
        _weight_spec((1, H)), _weight_spec((1, H)),         # final_layer_norm w, b
        _weight_spec((H, E)), _weight_spec((1, E)),         # ff intermediate
        _weight_spec((E, H)), _weight_spec((1, H)),         # ff output
    ]

    grid_spec = pltpu.PrefetchScalarGridSpec(
        num_scalar_prefetch=0,
        grid=(B, n_tq),
        in_specs=in_specs,
        out_specs=pl.BlockSpec((1, tq, H), lambda b, t: (b, t, 0)),
        scratch_shapes=[
            pltpu.VMEM((n_kb, num_heads, tk, hd), jnp.bfloat16),   # K cache
            pltpu.VMEM((n_kb, num_heads, tk, hd), jnp.bfloat16),   # V cache
        ],
    )

    return pl.pallas_call(
        kernel,
        out_shape=jax.ShapeDtypeStruct((B, T, H), out_dtype or x.dtype),
        grid_spec=grid_spec,
        compiler_params=pltpu.CompilerParams(
            # batch axis parallel (megacore); query-tile axis arbitrary so the
            # per-batch-element K/V scratch cache is carried across query tiles.
            dimension_semantics=("parallel", "arbitrary"),
            vmem_limit_bytes=vmem_limit_bytes,
        ),
    )(
        x, x_kv,
        params["ln_w"], params["ln_b"],
        params["q_w"], params["q_b"],
        params["k_w"], params["k_b"],
        params["v_w"], params["v_b"],
        params["o_w"], params["o_b"],
        params["fln_w"], params["fln_b"],
        params["ff1_w"], params["ff1_b"],
        params["ff2_w"], params["ff2_b"],
    )


def transformer_block_reference(x, params, *, num_heads, layer_norm_first):
    """Pure-JAX f32 reference mirroring the PyTorch forward (eval mode, no mask)."""
    B, T, H = x.shape
    hd = H // num_heads
    scaling = float(hd) ** -0.5

    def ln(y, w, b):
        mu = jnp.mean(y, -1, keepdims=True)
        var = jnp.mean((y - mu) ** 2, -1, keepdims=True)
        return (y - mu) / jnp.sqrt(var + 1e-5) * w[0] + b[0]

    residual = x
    xa = ln(x, params["ln_w"], params["ln_b"]) if layer_norm_first else x
    q = (xa @ params["q_w"] + params["q_b"][0]) * scaling
    k = xa @ params["k_w"] + params["k_b"][0]
    v = xa @ params["v_w"] + params["v_b"][0]
    q = q.reshape(B, T, num_heads, hd).transpose(0, 2, 1, 3)
    k = k.reshape(B, T, num_heads, hd).transpose(0, 2, 1, 3)
    v = v.reshape(B, T, num_heads, hd).transpose(0, 2, 1, 3)
    s = jnp.einsum("bhqd,bhkd->bhqk", q, k)
    p = jax.nn.softmax(s, axis=-1)
    attn = jnp.einsum("bhqk,bhkd->bhqd", p, v).transpose(0, 2, 1, 3).reshape(B, T, H)
    attn = attn @ params["o_w"] + params["o_b"][0]
    x = residual + attn

    def ff(y):
        h1 = jax.nn.gelu(y @ params["ff1_w"] + params["ff1_b"][0], approximate=False)
        return h1 @ params["ff2_w"] + params["ff2_b"][0]

    if layer_norm_first:
        x = x + ff(ln(x, params["fln_w"], params["fln_b"]))
    else:
        x = ln(x, params["ln_w"], params["ln_b"])
        x = ln(x + ff(x), params["fln_w"], params["fln_b"])
    return x


if __name__ == "__main__":
    B, T, H, NUM_HEADS, E = 2, 16, 128, 4, 256

    key = jax.random.PRNGKey(0)
    ks = jax.random.split(key, 16)

    def init(k, shape, scale=0.05):
        return (scale * jax.random.normal(k, shape)).astype(jnp.float32)

    params = {
        # LayerNorms: torch default init (weight=1, bias=0)
        "ln_w": jnp.ones((1, H), jnp.float32), "ln_b": jnp.zeros((1, H), jnp.float32),
        "fln_w": jnp.ones((1, H), jnp.float32), "fln_b": jnp.zeros((1, H), jnp.float32),
        # attention projections (stored as (in, out))
        "q_w": init(ks[0], (H, H)), "q_b": init(ks[1], (1, H)),
        "k_w": init(ks[2], (H, H)), "k_b": init(ks[3], (1, H)),
        "v_w": init(ks[4], (H, H)), "v_b": init(ks[5], (1, H)),
        "o_w": init(ks[6], (H, H)), "o_b": init(ks[7], (1, H)),
        # feed-forward
        "ff1_w": init(ks[8], (H, E)), "ff1_b": init(ks[9], (1, E)),
        "ff2_w": init(ks[10], (E, H)), "ff2_b": init(ks[11], (1, H)),
    }

    x = jax.random.normal(ks[12], (B, T, H), dtype=jnp.float32)
    prepared = prepare_params(params, num_heads=NUM_HEADS)

    for lnf in (True, False):
        ref = transformer_block_reference(x, params, num_heads=NUM_HEADS,
                                          layer_norm_first=lnf)
        # 1) default tiling (single query tile, single key block)
        out = transformer_block(x, prepared, num_heads=NUM_HEADS, layer_norm_first=lnf)
        out = jax.block_until_ready(out)
        assert out.shape == (B, T, H)
        assert jnp.allclose(out, ref, atol=3e-2, rtol=3e-2), \
            f"mismatch (default tiles) for layer_norm_first={lnf}"
        # 2) forced small tiles: exercises multi-query-tile K/V cache reuse and
        #    the flash-style online-softmax loop over key blocks.
        out2 = transformer_block(x, prepared, num_heads=NUM_HEADS,
                                 layer_norm_first=lnf, tq=8, tk=8)
        out2 = jax.block_until_ready(out2)
        assert jnp.allclose(out2, ref, atol=3e-2, rtol=3e-2), \
            f"mismatch (tq=8, tk=8) for layer_norm_first={lnf}"

    print("KERNEL_OK")
</pallas_src>

<mosaic_0001>
module attributes {stable_mosaic.version = 11 : i64} {
  func.func @transformer_block_kernel(%arg0: i32, %arg1: i32, %arg2: memref<1x16x128xf32, #tpu.memory_space<vmem>>, %arg3: memref<1x16x128xbf16, #tpu.memory_space<vmem>>, %arg4: memref<1x128xf32, #tpu.memory_space<vmem>>, %arg5: memref<1x128xf32, #tpu.memory_space<vmem>>, %arg6: memref<128x128xbf16, #tpu.memory_space<vmem>>, %arg7: memref<1x128xf32, #tpu.memory_space<vmem>>, %arg8: memref<128x128xbf16, #tpu.memory_space<vmem>>, %arg9: memref<1x128xf32, #tpu.memory_space<vmem>>, %arg10: memref<128x128xbf16, #tpu.memory_space<vmem>>, %arg11: memref<1x128xf32, #tpu.memory_space<vmem>>, %arg12: memref<128x128xbf16, #tpu.memory_space<vmem>>, %arg13: memref<1x128xf32, #tpu.memory_space<vmem>>, %arg14: memref<1x128xf32, #tpu.memory_space<vmem>>, %arg15: memref<1x128xf32, #tpu.memory_space<vmem>>, %arg16: memref<128x256xbf16, #tpu.memory_space<vmem>>, %arg17: memref<1x256xf32, #tpu.memory_space<vmem>>, %arg18: memref<256x128xbf16, #tpu.memory_space<vmem>>, %arg19: memref<1x128xf32, #tpu.memory_space<vmem>>, %arg20: memref<1x16x128xf32, #tpu.memory_space<vmem>>, %arg21: memref<1x4x16x32xbf16, #tpu.memory_space<vmem>>, %arg22: memref<1x4x16x32xbf16, #tpu.memory_space<vmem>>) attributes {dimension_semantics = [#tpu.dimension_semantics<parallel>, #tpu.dimension_semantics<arbitrary>], iteration_bounds = array<i64: 2, 1>, scalar_prefetch = 0 : i64, scratch_operands = 2 : i64, tpu.core_type = #tpu.core_type<tc>, window_params = [{transform_indices = @transform_0, window_bounds = array<i64: 1, 16, 128>}, {transform_indices = @transform_1, window_bounds = array<i64: 1, 16, 128>}, {pipeline_mode = #tpu.pipeline_mode<synchronous>, transform_indices = @transform_2, window_bounds = array<i64: 1, 128>}, {pipeline_mode = #tpu.pipeline_mode<synchronous>, transform_indices = @transform_3, window_bounds = array<i64: 1, 128>}, {pipeline_mode = #tpu.pipeline_mode<synchronous>, transform_indices = @transform_4, window_bounds = array<i64: 128, 128>}, {pipeline_mode = #tpu.pipeline_mode<synchronous>, transform_indices = @transform_5, window_bounds = array<i64: 1, 128>}, {pipeline_mode = #tpu.pipeline_mode<synchronous>, transform_indices = @transform_6, window_bounds = array<i64: 128, 128>}, {pipeline_mode = #tpu.pipeline_mode<synchronous>, transform_indices = @transform_7, window_bounds = array<i64: 1, 128>}, {pipeline_mode = #tpu.pipeline_mode<synchronous>, transform_indices = @transform_8, window_bounds = array<i64: 128, 128>}, {pipeline_mode = #tpu.pipeline_mode<synchronous>, transform_indices = @transform_9, window_bounds = array<i64: 1, 128>}, {pipeline_mode = #tpu.pipeline_mode<synchronous>, transform_indices = @transform_10, window_bounds = array<i64: 128, 128>}, {pipeline_mode = #tpu.pipeline_mode<synchronous>, transform_indices = @transform_11, window_bounds = array<i64: 1, 128>}, {pipeline_mode = #tpu.pipeline_mode<synchronous>, transform_indices = @transform_12, window_bounds = array<i64: 1, 128>}, {pipeline_mode = #tpu.pipeline_mode<synchronous>, transform_indices = @transform_13, window_bounds = array<i64: 1, 128>}, {pipeline_mode = #tpu.pipeline_mode<synchronous>, transform_indices = @transform_14, window_bounds = array<i64: 128, 256>}, {pipeline_mode = #tpu.pipeline_mode<synchronous>, transform_indices = @transform_15, window_bounds = array<i64: 1, 256>}, {pipeline_mode = #tpu.pipeline_mode<synchronous>, transform_indices = @transform_16, window_bounds = array<i64: 256, 128>}, {pipeline_mode = #tpu.pipeline_mode<synchronous>, transform_indices = @transform_17, window_bounds = array<i64: 1, 128>}, {transform_indices = @transform_18, window_bounds = array<i64: 1, 16, 128>}]} {
    %c0 = arith.constant 0 : index
    %c0_0 = arith.constant 0 : index
    %c0_1 = arith.constant 0 : index
    %0 = vector.load %arg2[%c0, %c0_0, %c0_1] : memref<1x16x128xf32, #tpu.memory_space<vmem>>, vector<1x16x128xf32>
    %1 = vector.shape_cast %0 : vector<1x16x128xf32> to vector<16x128xf32>
    %c0_2 = arith.constant 0 : index
    %c0_3 = arith.constant 0 : index
    %2 = vector.load %arg4[%c0_2, %c0_3] : memref<1x128xf32, #tpu.memory_space<vmem>>, vector<1x128xf32>
    %3 = vector.shape_cast %2 : vector<1x128xf32> to vector<128xf32>
    %c0_4 = arith.constant 0 : index
    %c0_5 = arith.constant 0 : index
    %4 = vector.load %arg5[%c0_4, %c0_5] : memref<1x128xf32, #tpu.memory_space<vmem>>, vector<1x128xf32>
    %5 = vector.shape_cast %4 : vector<1x128xf32> to vector<128xf32>
    %c0_6 = arith.constant 0 : index
    %c0_7 = arith.constant 0 : index
    %6 = vector.load %arg14[%c0_6, %c0_7] : memref<1x128xf32, #tpu.memory_space<vmem>>, vector<1x128xf32>
    %7 = vector.shape_cast %6 : vector<1x128xf32> to vector<128xf32>
    %c0_8 = arith.constant 0 : index
    %c0_9 = arith.constant 0 : index
    %8 = vector.load %arg15[%c0_8, %c0_9] : memref<1x128xf32, #tpu.memory_space<vmem>>, vector<1x128xf32>
    %9 = vector.shape_cast %8 : vector<1x128xf32> to vector<128xf32>
    %c0_10 = arith.constant 0 : index
    %c0_11 = arith.constant 0 : index
    %10 = vector.load %arg7[%c0_10, %c0_11] : memref<1x128xf32, #tpu.memory_space<vmem>>, vector<1x128xf32>
    %11 = vector.shape_cast %10 : vector<1x128xf32> to vector<128xf32>
    %c0_12 = arith.constant 0 : index
    %c0_13 = arith.constant 0 : index
    %12 = vector.load %arg9[%c0_12, %c0_13] : memref<1x128xf32, #tpu.memory_space<vmem>>, vector<1x128xf32>
    %13 = vector.shape_cast %12 : vector<1x128xf32> to vector<128xf32>
    %c0_14 = arith.constant 0 : index
    %c0_15 = arith.constant 0 : index
    %14 = vector.load %arg11[%c0_14, %c0_15] : memref<1x128xf32, #tpu.memory_space<vmem>>, vector<1x128xf32>
    %15 = vector.shape_cast %14 : vector<1x128xf32> to vector<128xf32>
    %c0_16 = arith.constant 0 : index
    %c0_17 = arith.constant 0 : index
    %16 = vector.load %arg13[%c0_16, %c0_17] : memref<1x128xf32, #tpu.memory_space<vmem>>, vector<1x128xf32>
    %17 = vector.shape_cast %16 : vector<1x128xf32> to vector<128xf32>
    %c0_18 = arith.constant 0 : index
    %c0_19 = arith.constant 0 : index
    %18 = vector.load %arg17[%c0_18, %c0_19] : memref<1x256xf32, #tpu.memory_space<vmem>>, vector<1x256xf32>
    %19 = vector.shape_cast %18 : vector<1x256xf32> to vector<256xf32>
    %c0_20 = arith.constant 0 : index
    %c0_21 = arith.constant 0 : index
    %20 = vector.load %arg19[%c0_20, %c0_21] : memref<1x128xf32, #tpu.memory_space<vmem>>, vector<1x128xf32>
    %21 = vector.shape_cast %20 : vector<1x128xf32> to vector<128xf32>
    %c0_i32 = arith.constant 0 : i32
    %22 = arith.cmpi eq, %arg1, %c0_i32 : i32
    %23 = arith.extui %22 : i1 to i32
    %c0_i32_22 = arith.constant 0 : i32
    %24 = arith.cmpi ne, %23, %c0_i32_22 : i32
    scf.if %24 {
      %c0_62 = arith.constant 0 : index
      %c0_63 = arith.constant 0 : index
      %c0_64 = arith.constant 0 : index
      %128 = vector.load %arg3[%c0_62, %c0_63, %c0_64] : memref<1x16x128xbf16, #tpu.memory_space<vmem>>, vector<1x16x128xbf16>
      %129 = vector.shape_cast %128 : vector<1x16x128xbf16> to vector<16x128xbf16>
      %130 = arith.extf %129 : vector<16x128xbf16> to vector<16x128xf32>
      %cst_65 = arith.constant dense<0.000000e+00> : vector<16xf32>
      %131 = vector.multi_reduction <add>, %130, %cst_65 [1] : vector<16x128xf32> to vector<16xf32>
      %132 = vector.shape_cast %131 : vector<16xf32> to vector<16x1xf32>
      %cst_66 = arith.constant 1.280000e+02 : f32
      %133 = vector.broadcast %cst_66 : f32 to vector<16x1xf32>
      %134 = arith.divf %132, %133 : vector<16x1xf32>
      %135 = vector.broadcast %134 : vector<16x1xf32> to vector<16x128xf32>
      %136 = arith.subf %130, %135 : vector<16x128xf32>
      %137 = arith.mulf %136, %136 : vector<16x128xf32>
      %cst_67 = arith.constant dense<0.000000e+00> : vector<16xf32>
      %138 = vector.multi_reduction <add>, %137, %cst_67 [1] : vector<16x128xf32> to vector<16xf32>
      %139 = vector.shape_cast %138 : vector<16xf32> to vector<16x1xf32>
      %cst_68 = arith.constant 1.280000e+02 : f32
      %140 = vector.broadcast %cst_68 : f32 to vector<16x1xf32>
      %141 = arith.divf %139, %140 : vector<16x1xf32>
      %cst_69 = arith.constant 9.99999974E-6 : f32
      %142 = vector.broadcast %cst_69 : f32 to vector<16x1xf32>
      %143 = arith.addf %141, %142 : vector<16x1xf32>
      %144 = math.rsqrt %143 : vector<16x1xf32>
      %145 = vector.broadcast %144 : vector<16x1xf32> to vector<16x128xf32>
      %146 = arith.mulf %136, %145 : vector<16x128xf32>
      %147 = vector.shape_cast %3 : vector<128xf32> to vector<1x128xf32>
      %148 = vector.broadcast %147 : vector<1x128xf32> to vector<16x128xf32>
      %149 = arith.mulf %146, %148 : vector<16x128xf32>
      %150 = vector.shape_cast %5 : vector<128xf32> to vector<1x128xf32>
      %151 = vector.broadcast %150 : vector<1x128xf32> to vector<16x128xf32>
      %152 = arith.addf %149, %151 : vector<16x128xf32>
      %153 = arith.truncf %152 : vector<16x128xf32> to vector<16x128xbf16>
      %c0_70 = arith.constant 0 : index
      %c0_71 = arith.constant 0 : index
      %154 = vector.load %arg8[%c0_70, %c0_71] : memref<128x128xbf16, #tpu.memory_space<vmem>>, vector<128x128xbf16>
      %cst_72 = arith.constant dense<0.000000e+00> : vector<16x128xf32>
      %155 = tpu.matmul %153, %154, %cst_72 {dimension_numbers = #tpu.dot_dimension_numbers<[1], [0], [0], [1], [0, 0, 1, 1], [], []>} : vector<16x128xbf16>, vector<128x128xbf16>, vector<16x128xf32> -> vector<16x128xf32>
      %156 = vector.shape_cast %13 : vector<128xf32> to vector<1x128xf32>
      %157 = vector.broadcast %156 : vector<1x128xf32> to vector<16x128xf32>
      %158 = arith.addf %155, %157 : vector<16x128xf32>
      %c0_73 = arith.constant 0 : index
      %c0_74 = arith.constant 0 : index
      %159 = vector.load %arg10[%c0_73, %c0_74] : memref<128x128xbf16, #tpu.memory_space<vmem>>, vector<128x128xbf16>
      %cst_75 = arith.constant dense<0.000000e+00> : vector<16x128xf32>
      %160 = tpu.matmul %153, %159, %cst_75 {dimension_numbers = #tpu.dot_dimension_numbers<[1], [0], [0], [1], [0, 0, 1, 1], [], []>} : vector<16x128xbf16>, vector<128x128xbf16>, vector<16x128xf32> -> vector<16x128xf32>
      %161 = vector.shape_cast %15 : vector<128xf32> to vector<1x128xf32>
      %162 = vector.broadcast %161 : vector<1x128xf32> to vector<16x128xf32>
      %163 = arith.addf %160, %162 : vector<16x128xf32>
      %164 = arith.truncf %158 : vector<16x128xf32> to vector<16x128xbf16>
      %165 = vector.shape_cast %164 : vector<16x128xbf16> to vector<1x16x4x32xbf16>
      %166 = tpu.transpose %165, [0, 2, 1, 3] : vector<1x16x4x32xbf16> -> vector<1x4x16x32xbf16>
      %c0_76 = arith.constant 0 : index
      %c0_77 = arith.constant 0 : index
      %c0_78 = arith.constant 0 : index
      %c0_79 = arith.constant 0 : index
      %167 = vector.load %arg21[%c0_76, %c0_77, %c0_78, %c0_79] : memref<1x4x16x32xbf16, #tpu.memory_space<vmem>>, vector<1x4x16x32xbf16>
      tpu.vector_store %arg21[%c0_76, %c0_77, %c0_78, %c0_79], %166 {strides = array<i32>} : memref<1x4x16x32xbf16, #tpu.memory_space<vmem>>, vector<1x4x16x32xbf16>,
      %168 = arith.truncf %163 : vector<16x128xf32> to vector<16x128xbf16>
      %169 = vector.shape_cast %168 : vector<16x128xbf16> to vector<1x16x4x32xbf16>
      %170 = tpu.transpose %169, [0, 2, 1, 3] : vector<1x16x4x32xbf16> -> vector<1x4x16x32xbf16>
      %c0_80 = arith.constant 0 : index
      %c0_81 = arith.constant 0 : index
      %c0_82 = arith.constant 0 : index
      %c0_83 = arith.constant 0 : index
      %171 = vector.load %arg22[%c0_80, %c0_81, %c0_82, %c0_83] : memref<1x4x16x32xbf16, #tpu.memory_space<vmem>>, vector<1x4x16x32xbf16>
      tpu.vector_store %arg22[%c0_80, %c0_81, %c0_82, %c0_83], %170 {strides = array<i32>} : memref<1x4x16x32xbf16, #tpu.memory_space<vmem>>, vector<1x4x16x32xbf16>,
    } else {
    }
    %cst = arith.constant dense<0.000000e+00> : vector<16xf32>
    %25 = vector.multi_reduction <add>, %1, %cst [1] : vector<16x128xf32> to vector<16xf32>
    %26 = vector.shape_cast %25 : vector<16xf32> to vector<16x1xf32>
    %cst_23 = arith.constant 1.280000e+02 : f32
    %27 = vector.broadcast %cst_23 : f32 to vector<16x1xf32>
    %28 = arith.divf %26, %27 : vector<16x1xf32>
    %29 = vector.broadcast %28 : vector<16x1xf32> to vector<16x128xf32>
    %30 = arith.subf %1, %29 : vector<16x128xf32>
    %31 = arith.mulf %30, %30 : vector<16x128xf32>
    %cst_24 = arith.constant dense<0.000000e+00> : vector<16xf32>
    %32 = vector.multi_reduction <add>, %31, %cst_24 [1] : vector<16x128xf32> to vector<16xf32>
    %33 = vector.shape_cast %32 : vector<16xf32> to vector<16x1xf32>
    %cst_25 = arith.constant 1.280000e+02 : f32
    %34 = vector.broadcast %cst_25 : f32 to vector<16x1xf32>
    %35 = arith.divf %33, %34 : vector<16x1xf32>
    %cst_26 = arith.constant 9.99999974E-6 : f32
    %36 = vector.broadcast %cst_26 : f32 to vector<16x1xf32>
    %37 = arith.addf %35, %36 : vector<16x1xf32>
    %38 = math.rsqrt %37 : vector<16x1xf32>
    %39 = vector.broadcast %38 : vector<16x1xf32> to vector<16x128xf32>
    %40 = arith.mulf %30, %39 : vector<16x128xf32>
    %41 = vector.shape_cast %3 : vector<128xf32> to vector<1x128xf32>
    %42 = vector.broadcast %41 : vector<1x128xf32> to vector<16x128xf32>
    %43 = arith.mulf %40, %42 : vector<16x128xf32>
    %44 = vector.shape_cast %5 : vector<128xf32> to vector<1x128xf32>
    %45 = vector.broadcast %44 : vector<1x128xf32> to vector<16x128xf32>
    %46 = arith.addf %43, %45 : vector<16x128xf32>
    %47 = arith.truncf %46 : vector<16x128xf32> to vector<16x128xbf16>
    %c0_27 = arith.constant 0 : index
    %c0_28 = arith.constant 0 : index
    %48 = vector.load %arg6[%c0_27, %c0_28] : memref<128x128xbf16, #tpu.memory_space<vmem>>, vector<128x128xbf16>
    %cst_29 = arith.constant dense<0.000000e+00> : vector<16x128xf32>
    %49 = tpu.matmul %47, %48, %cst_29 {dimension_numbers = #tpu.dot_dimension_numbers<[1], [0], [0], [1], [0, 0, 1, 1], [], []>} : vector<16x128xbf16>, vector<128x128xbf16>, vector<16x128xf32> -> vector<16x128xf32>
    %50 = vector.shape_cast %11 : vector<128xf32> to vector<1x128xf32>
    %51 = vector.broadcast %50 : vector<1x128xf32> to vector<16x128xf32>
    %52 = arith.addf %49, %51 : vector<16x128xf32>
    %53 = arith.truncf %52 : vector<16x128xf32> to vector<16x128xbf16>
    %54 = vector.shape_cast %53 : vector<16x128xbf16> to vector<16x4x32xbf16>
    %55 = tpu.transpose %54, [1, 0, 2] : vector<16x4x32xbf16> -> vector<4x16x32xbf16>
    %c0_30 = arith.constant 0 : index
    %c0_31 = arith.constant 0 : index
    %c0_32 = arith.constant 0 : index
    %c0_33 = arith.constant 0 : index
    %56 = vector.load %arg21[%c0_30, %c0_31, %c0_32, %c0_33] : memref<1x4x16x32xbf16, #tpu.memory_space<vmem>>, vector<1x4x16x32xbf16>
    %57 = vector.shape_cast %56 : vector<1x4x16x32xbf16> to vector<4x16x32xbf16>
    %c0_34 = arith.constant 0 : index
    %c0_35 = arith.constant 0 : index
    %c0_36 = arith.constant 0 : index
    %c0_37 = arith.constant 0 : index
    %58 = vector.load %arg22[%c0_34, %c0_35, %c0_36, %c0_37] : memref<1x4x16x32xbf16, #tpu.memory_space<vmem>>, vector<1x4x16x32xbf16>
    %59 = vector.shape_cast %58 : vector<1x4x16x32xbf16> to vector<4x16x32xbf16>
    "tpu.trace_start"() <{level = 10 : i32, message = "hqd,hkd->hqk"}> : () -> ()
    %cst_38 = arith.constant dense<0.000000e+00> : vector<4x16x16xf32>
    %60 = tpu.matmul %55, %57, %cst_38 {dimension_numbers = #tpu.dot_dimension_numbers<[2], [2], [1], [1], [0, 0, 0, 1, 1, 1], [0], [0]>} : vector<4x16x32xbf16>, vector<4x16x32xbf16>, vector<4x16x16xf32> -> vector<4x16x16xf32>
    "tpu.trace_stop"() : () -> ()
    %cst_39 = arith.constant dense<0xFF800000> : vector<4x16xf32>
    %61 = vector.multi_reduction <maximumf>, %60, %cst_39 [2] : vector<4x16x16xf32> to vector<4x16xf32>
    %62 = vector.shape_cast %61 : vector<4x16xf32> to vector<4x16x1xf32>
    %63 = vector.broadcast %62 : vector<4x16x1xf32> to vector<4x16x16xf32>
    %64 = arith.subf %60, %63 : vector<4x16x16xf32>
    %65 = math.exp %64 : vector<4x16x16xf32>
    %cst_40 = arith.constant dense<0.000000e+00> : vector<4x16xf32>
    %66 = vector.multi_reduction <add>, %65, %cst_40 [2] : vector<4x16x16xf32> to vector<4x16xf32>
    %67 = vector.shape_cast %66 : vector<4x16xf32> to vector<4x16x1xf32>
    %68 = arith.truncf %65 : vector<4x16x16xf32> to vector<4x16x16xbf16>
    "tpu.trace_start"() <{level = 10 : i32, message = "hqk,hkd->hqd"}> : () -> ()
    %cst_41 = arith.constant dense<0.000000e+00> : vector<4x16x32xf32>
    %69 = tpu.matmul %68, %59, %cst_41 {dimension_numbers = #tpu.dot_dimension_numbers<[2], [1], [1], [2], [0, 0, 0, 1, 1, 2], [0], [0]>} : vector<4x16x16xbf16>, vector<4x16x32xbf16>, vector<4x16x32xf32> -> vector<4x16x32xf32>
    "tpu.trace_stop"() : () -> ()
    %70 = tpu.reciprocal %67 {approx = true} : vector<4x16x1xf32> -> vector<4x16x1xf32>
    %71 = vector.broadcast %70 : vector<4x16x1xf32> to vector<4x16x32xf32>
    %72 = arith.mulf %69, %71 : vector<4x16x32xf32>
    %73 = tpu.transpose %72, [1, 0, 2] : vector<4x16x32xf32> -> vector<16x4x32xf32>
    %74 = vector.shape_cast %73 : vector<16x4x32xf32> to vector<16x128xf32>
    %75 = arith.truncf %74 : vector<16x128xf32> to vector<16x128xbf16>
    %c0_42 = arith.constant 0 : index
    %c0_43 = arith.constant 0 : index
    %76 = vector.load %arg12[%c0_42, %c0_43] : memref<128x128xbf16, #tpu.memory_space<vmem>>, vector<128x128xbf16>
    %cst_44 = arith.constant dense<0.000000e+00> : vector<16x128xf32>
    %77 = tpu.matmul %75, %76, %cst_44 {dimension_numbers = #tpu.dot_dimension_numbers<[1], [0], [0], [1], [0, 0, 1, 1], [], []>} : vector<16x128xbf16>, vector<128x128xbf16>, vector<16x128xf32> -> vector<16x128xf32>
    %78 = vector.shape_cast %17 : vector<128xf32> to vector<1x128xf32>
    %79 = vector.broadcast %78 : vector<1x128xf32> to vector<16x128xf32>
    %80 = arith.addf %77, %79 : vector<16x128xf32>
    %81 = arith.addf %1, %80 : vector<16x128xf32>
    %cst_45 = arith.constant dense<0.000000e+00> : vector<16xf32>
    %82 = vector.multi_reduction <add>, %81, %cst_45 [1] : vector<16x128xf32> to vector<16xf32>
    %83 = vector.shape_cast %82 : vector<16xf32> to vector<16x1xf32>
    %cst_46 = arith.constant 1.280000e+02 : f32
    %84 = vector.broadcast %cst_46 : f32 to vector<16x1xf32>
    %85 = arith.divf %83, %84 : vector<16x1xf32>
    %86 = vector.broadcast %85 : vector<16x1xf32> to vector<16x128xf32>
    %87 = arith.subf %81, %86 : vector<16x128xf32>
    %88 = arith.mulf %87, %87 : vector<16x128xf32>
    %cst_47 = arith.constant dense<0.000000e+00> : vector<16xf32>
    %89 = vector.multi_reduction <add>, %88, %cst_47 [1] : vector<16x128xf32> to vector<16xf32>
    %90 = vector.shape_cast %89 : vector<16xf32> to vector<16x1xf32>
    %cst_48 = arith.constant 1.280000e+02 : f32
    %91 = vector.broadcast %cst_48 : f32 to vector<16x1xf32>
    %92 = arith.divf %90, %91 : vector<16x1xf32>
    %cst_49 = arith.constant 9.99999974E-6 : f32
    %93 = vector.broadcast %cst_49 : f32 to vector<16x1xf32>
    %94 = arith.addf %92, %93 : vector<16x1xf32>
    %95 = math.rsqrt %94 : vector<16x1xf32>
    %96 = vector.broadcast %95 : vector<16x1xf32> to vector<16x128xf32>
    %97 = arith.mulf %87, %96 : vector<16x128xf32>
    %98 = vector.shape_cast %7 : vector<128xf32> to vector<1x128xf32>
    %99 = vector.broadcast %98 : vector<1x128xf32> to vector<16x128xf32>
    %100 = arith.mulf %97, %99 : vector<16x128xf32>
    %101 = vector.shape_cast %9 : vector<128xf32> to vector<1x128xf32>
    %102 = vector.broadcast %101 : vector<1x128xf32> to vector<16x128xf32>
    %103 = arith.addf %100, %102 : vector<16x128xf32>
    %104 = arith.truncf %103 : vector<16x128xf32> to vector<16x128xbf16>
    %c0_50 = arith.constant 0 : index
    %c0_51 = arith.constant 0 : index
    %105 = vector.load %arg16[%c0_50, %c0_51] : memref<128x256xbf16, #tpu.memory_space<vmem>>, vector<128x256xbf16>
    %cst_52 = arith.constant dense<0.000000e+00> : vector<16x256xf32>
    %106 = tpu.matmul %104, %105, %cst_52 {dimension_numbers = #tpu.dot_dimension_numbers<[1], [0], [0], [1], [0, 0, 1, 1], [], []>} : vector<16x128xbf16>, vector<128x256xbf16>, vector<16x256xf32> -> vector<16x256xf32>
    %107 = vector.shape_cast %19 : vector<256xf32> to vector<1x256xf32>
    %108 = vector.broadcast %107 : vector<1x256xf32> to vector<16x256xf32>
    %109 = arith.addf %106, %108 : vector<16x256xf32>
    %cst_53 = arith.constant 5.000000e-01 : f32
    %110 = vector.broadcast %cst_53 : f32 to vector<16x256xf32>
    %111 = arith.mulf %110, %109 : vector<16x256xf32>
    %cst_54 = arith.constant 0.707106769 : f32
    %112 = vector.broadcast %cst_54 : f32 to vector<16x256xf32>
    %113 = arith.mulf %109, %112 : vector<16x256xf32>
    %114 = math.erf %113 : vector<16x256xf32>
    %cst_55 = arith.constant 1.000000e+00 : f32
    %115 = vector.broadcast %cst_55 : f32 to vector<16x256xf32>
    %116 = arith.addf %115, %114 : vector<16x256xf32>
    %117 = arith.mulf %111, %116 : vector<16x256xf32>
    %118 = arith.truncf %117 : vector<16x256xf32> to vector<16x256xbf16>
    %c0_56 = arith.constant 0 : index
    %c0_57 = arith.constant 0 : index
    %119 = vector.load %arg18[%c0_56, %c0_57] : memref<256x128xbf16, #tpu.memory_space<vmem>>, vector<256x128xbf16>
    %cst_58 = arith.constant dense<0.000000e+00> : vector<16x128xf32>
    %120 = tpu.matmul %118, %119, %cst_58 {dimension_numbers = #tpu.dot_dimension_numbers<[1], [0], [0], [1], [0, 0, 1, 1], [], []>} : vector<16x256xbf16>, vector<256x128xbf16>, vector<16x128xf32> -> vector<16x128xf32>
    %121 = vector.shape_cast %21 : vector<128xf32> to vector<1x128xf32>
    %122 = vector.broadcast %121 : vector<1x128xf32> to vector<16x128xf32>
    %123 = arith.addf %120, %122 : vector<16x128xf32>
    %124 = arith.addf %81, %123 : vector<16x128xf32>
    %c0_59 = arith.constant 0 : index
    %c0_60 = arith.constant 0 : index
    %c0_61 = arith.constant 0 : index
    %125 = vector.load %arg20[%c0_59, %c0_60, %c0_61] : memref<1x16x128xf32, #tpu.memory_space<vmem>>, vector<1x16x128xf32>
    %126 = vector.shape_cast %125 : vector<1x16x128xf32> to vector<16x128xf32>
    %127 = vector.shape_cast %124 : vector<16x128xf32> to vector<1x16x128xf32>
    tpu.vector_store %arg20[%c0_59, %c0_60, %c0_61], %127 {strides = array<i32>} : memref<1x16x128xf32, #tpu.memory_space<vmem>>, vector<1x16x128xf32>,
    return
  }
  func.func @transform_0(%arg0: i32, %arg1: i32) -> (i32, i32, i32) {
    %c0_i32 = arith.constant 0 : i32
    %c0_i32_0 = arith.constant 0 : i32
    return %arg0, %arg1, %c0_i32 : i32, i32, i32
  }
  func.func @transform_1(%arg0: i32, %arg1: i32) -> (i32, i32, i32) {
    %c0_i32 = arith.constant 0 : i32
    %c0_i32_0 = arith.constant 0 : i32
    %c0_i32_1 = arith.constant 0 : i32
    return %arg0, %c0_i32, %c0_i32_0 : i32, i32, i32
  }
  func.func @transform_2(%arg0: i32, %arg1: i32) -> (i32, i32) {
    %c0_i32 = arith.constant 0 : i32
    %c0_i32_0 = arith.constant 0 : i32
    %c0_i32_1 = arith.constant 0 : i32
    return %c0_i32, %c0_i32_0 : i32, i32
  }
  func.func @transform_3(%arg0: i32, %arg1: i32) -> (i32, i32) {
    %c0_i32 = arith.constant 0 : i32
    %c0_i32_0 = arith.constant 0 : i32
    %c0_i32_1 = arith.constant 0 : i32
    return %c0_i32, %c0_i32_0 : i32, i32
  }
  func.func @transform_4(%arg0: i32, %arg1: i32) -> (i32, i32) {
    %c0_i32 = arith.constant 0 : i32
    %c0_i32_0 = arith.constant 0 : i32
    %c0_i32_1 = arith.constant 0 : i32
    return %c0_i32, %c0_i32_0 : i32, i32
  }
  func.func @transform_5(%arg0: i32, %arg1: i32) -> (i32, i32) {
    %c0_i32 = arith.constant 0 : i32
    %c0_i32_0 = arith.constant 0 : i32
    %c0_i32_1 = arith.constant 0 : i32
    return %c0_i32, %c0_i32_0 : i32, i32
  }
  func.func @transform_6(%arg0: i32, %arg1: i32) -> (i32, i32) {
    %c0_i32 = arith.constant 0 : i32
    %c0_i32_0 = arith.constant 0 : i32
    %c0_i32_1 = arith.constant 0 : i32
    return %c0_i32, %c0_i32_0 : i32, i32
  }
  func.func @transform_7(%arg0: i32, %arg1: i32) -> (i32, i32) {
    %c0_i32 = arith.constant 0 : i32
    %c0_i32_0 = arith.constant 0 : i32
    %c0_i32_1 = arith.constant 0 : i32
    return %c0_i32, %c0_i32_0 : i32, i32
  }
  func.func @transform_8(%arg0: i32, %arg1: i32) -> (i32, i32) {
    %c0_i32 = arith.constant 0 : i32
    %c0_i32_0 = arith.constant 0 : i32
    %c0_i32_1 = arith.constant 0 : i32
    return %c0_i32, %c0_i32_0 : i32, i32
  }
  func.func @transform_9(%arg0: i32, %arg1: i32) -> (i32, i32) {
    %c0_i32 = arith.constant 0 : i32
    %c0_i32_0 = arith.constant 0 : i32
    %c0_i32_1 = arith.constant 0 : i32
    return %c0_i32, %c0_i32_0 : i32, i32
  }
  func.func @transform_10(%arg0: i32, %arg1: i32) -> (i32, i32) {
    %c0_i32 = arith.constant 0 : i32
    %c0_i32_0 = arith.constant 0 : i32
    %c0_i32_1 = arith.constant 0 : i32
    return %c0_i32, %c0_i32_0 : i32, i32
  }
  func.func @transform_11(%arg0: i32, %arg1: i32) -> (i32, i32) {
    %c0_i32 = arith.constant 0 : i32
    %c0_i32_0 = arith.constant 0 : i32
    %c0_i32_1 = arith.constant 0 : i32
    return %c0_i32, %c0_i32_0 : i32, i32
  }
  func.func @transform_12(%arg0: i32, %arg1: i32) -> (i32, i32) {
    %c0_i32 = arith.constant 0 : i32
    %c0_i32_0 = arith.constant 0 : i32
    %c0_i32_1 = arith.constant 0 : i32
    return %c0_i32, %c0_i32_0 : i32, i32
  }
  func.func @transform_13(%arg0: i32, %arg1: i32) -> (i32, i32) {
    %c0_i32 = arith.constant 0 : i32
    %c0_i32_0 = arith.constant 0 : i32
    %c0_i32_1 = arith.constant 0 : i32
    return %c0_i32, %c0_i32_0 : i32, i32
  }
  func.func @transform_14(%arg0: i32, %arg1: i32) -> (i32, i32) {
    %c0_i32 = arith.constant 0 : i32
    %c0_i32_0 = arith.constant 0 : i32
    %c0_i32_1 = arith.constant 0 : i32
    return %c0_i32, %c0_i32_0 : i32, i32
  }
  func.func @transform_15(%arg0: i32, %arg1: i32) -> (i32, i32) {
    %c0_i32 = arith.constant 0 : i32
    %c0_i32_0 = arith.constant 0 : i32
    %c0_i32_1 = arith.constant 0 : i32
    return %c0_i32, %c0_i32_0 : i32, i32
  }
  func.func @transform_16(%arg0: i32, %arg1: i32) -> (i32, i32) {
    %c0_i32 = arith.constant 0 : i32
    %c0_i32_0 = arith.constant 0 : i32
    %c0_i32_1 = arith.constant 0 : i32
    return %c0_i32, %c0_i32_0 : i32, i32
  }
  func.func @transform_17(%arg0: i32, %arg1: i32) -> (i32, i32) {
    %c0_i32 = arith.constant 0 : i32
    %c0_i32_0 = arith.constant 0 : i32
    %c0_i32_1 = arith.constant 0 : i32
    return %c0_i32, %c0_i32_0 : i32, i32
  }
  func.func @transform_18(%arg0: i32, %arg1: i32) -> (i32, i32, i32) {
    %c0_i32 = arith.constant 0 : i32
    %c0_i32_0 = arith.constant 0 : i32
    return %arg0, %arg1, %c0_i32 : i32, i32, i32
  }
}

</mosaic_0001>

<bundles_post_ra>
// kernel: tpu_custom_call.1
= control target key start
LH: loop header
LB: loop body
LE: loop exit
PB: predicated region body
PF: predicated region fallthrough
CT: control target
= control target key end

     0   :  { %s5333_s0 = inlined_call_operand.hbm [shape: f32[2,16,128], index: 0, kind: input, shape index: {}]   ;;  %s5334_s1 = inlined_call_operand.hbm [shape: bf16[2,16,128], index: 1, kind: input, shape index: {}]   ;;  %s5335_s2 = inlined_call_operand.vmem [shape: f32[1,128], index: 2, kind: input, shape index: {}]   ;;  %s5336_s3 = inlined_call_operand.hbm [shape: f32[1,128], index: 3, kind: input, shape index: {}]   ;;  %s5337_s4 = inlined_call_operand.hbm [shape: bf16[128,128], index: 4, kind: input, shape index: {}]   ;;  %s5338_s5 = inlined_call_operand.vmem [shape: f32[1,128], index: 5, kind: input, shape index: {}]   ;;  %s5339_s6 = inlined_call_operand.hbm [shape: bf16[128,128], index: 6, kind: input, shape index: {}]   ;;  %s5340_s7 = inlined_call_operand.vmem [shape: f32[1,128], index: 7, kind: input, shape index: {}]   ;;  %s5341_s8 = inlined_call_operand.hbm [shape: bf16[128,128], index: 8, kind: input, shape index: {}]   ;;  %s5342_s9 = inlined_call_operand.vmem [shape: f32[1,128], index: 9, kind: input, shape index: {}]   ;;  %s5343_s10 = inlined_call_operand.hbm [shape: bf16[128,128], index: 10, kind: input, shape index: {}]   ;;  %s5344_s11 = inlined_call_operand.vmem [shape: f32[1,128], index: 11, kind: input, shape index: {}]   ;;  %s5345_s12 = inlined_call_operand.vmem [shape: f32[1,128], index: 12, kind: input, shape index: {}]   ;;  %s5346_s13 = inlined_call_operand.vmem [shape: f32[1,128], index: 13, kind: input, shape index: {}]   ;;  %s5347_s14 = inlined_call_operand.hbm [shape: bf16[128,256], index: 14, kind: input, shape index: {}]   ;;  %s5348_s15 = inlined_call_operand.vmem [shape: f32[1,256], index: 15, kind: input, shape index: {}]   ;;  %s5349_s16 = inlined_call_operand.hbm [shape: bf16[256,128], index: 16, kind: input, shape index: {}]   ;;  %s5350_s17 = inlined_call_operand.vmem [shape: f32[1,128], index: 17, kind: input, shape index: {}]   ;;  %s5351_s18 = inlined_call_operand.hbm [shape: f32[2,16,128], index: 18, kind: output, shape index: {}]  }
   0x1   :  { %5364 = sst [smem:[#allocation34_spill]] %s5333_s0 }
   0x2   :  { %5365 = sst [smem:[#allocation35_spill]] %s5334_s1 }
   0x3   :  { %5366 = sst [smem:[#allocation36_spill]] %s5335_s2 }
   0x4   :  { %5367 = sst [smem:[#allocation37_spill]] %s5336_s3 }
   0x5   :  { %5368 = sst [smem:[#allocation38_spill]] %s5337_s4 }
   0x6   :  { %5369 = sst [smem:[#allocation39_spill]] %s5339_s6 }
   0x7   :  { %5370 = sst [smem:[#allocation40_spill]] %s5341_s8 }
   0x8   :  { %5371 = sst [smem:[#allocation41_spill]] %s5343_s10 }
   0x9   :  { %5372 = sst [smem:[#allocation42_spill]] %s5345_s12 }
   0xa   :  { %5373 = sst [smem:[#allocation43_spill]] %s5346_s13 }
   0xb   :  { %5374 = sst [smem:[#allocation44_spill]] %s5347_s14 }
   0xc   :  { %5375 = sst [smem:[#allocation45_spill]] %s5348_s15 }
   0xd   :  { %5376 = sst [smem:[#allocation46_spill]] %s5349_s16 }
   0xe   :  { %5377 = sst [smem:[#allocation47_spill]] %s5350_s17 }
   0xf   :  { %5378 = sst [smem:[#allocation48_spill]] %s5351_s18 }
  0x10   :  { %23 = vsyncpa [#allocation5], 0 }
  0x11   :  { %25 = vsyncpa [#allocation5 + $0x1], 0 }
  0x12   :  { %26 = vsyncpa [#allocation8], 0 }
  0x13   :  { %28 = vsyncpa [#allocation8 + $0x1], 0 }
  0x14   :  { %29 = vsyncpa [#allocation11], 0 }
  0x15   :  { %30 = vsyncpa [#allocation14], 0 }
  0x16   :  { %31 = vsyncpa [#allocation17], 0 }
  0x17   :  { %32 = vsyncpa [#allocation6], 0 }
  0x18   :  { %34 = vsyncpa [#allocation6 + $0x1], 0  ;;  %s4438_s27 = smov 0   ;;  %s4440_s28 = smov 0  }
  0x19   :  { %s4442_s29 = smov 0   ;;  %s4444_s30 = smov 0  }
  0x1a   :  { %s4446_s0 = smov 0   ;;  %s4448_s19 = smov 0  }
  0x1b LB: > { %5379 = sst [smem:[#allocation27_spill]] %s4302_s27  ;;  %s4469_s1 = sadd.s32 4294967295, %s4322_s19   ;;  %s4322_s19 = sphi %s4448_s19, %s40_s19   ;;  %s4318_s0 = sphi %s4446_s0, %s5423_s0   ;;  %s4314_s30 = sphi %s4444_s30, %s5422_s30   ;;  %s4310_s29 = sphi %s4442_s29, %s5418_s29   ;;  %s4306_s28 = sphi %s4440_s28, %s5421_s28   ;;  %s4302_s27 = sphi %s4438_s27, %s5420_s27  }
  0x1c   : > { %5380 = sst [smem:[#allocation28_spill]] %s4310_s29  ;;  %p3310_p0 = scmp.ge.s32.totalorder %s4322_s19, 1 }
  0x1d   : > { %5381 = sst [smem:[#allocation29_spill]] %s4314_s30  ;;  %p75_p1 = scmp.eq.s32.totalorder %s4469_s1, 0 }
  0x1e   : > { %p475_p2 = scmp.lt.s32.totalorder %s4322_s19, 3  ;;  %s5382_s3 = sld [smem:[#allocation37_spill]] }
  0x1f   : > { %p3318_p4 = scmp.ge.s32.totalorder %s4322_s19, 2  ;;  %s4324_s23 = smov [#allocation9]  }
  0x20   : > { %p4477_p3 = pnand %p3310_p0, %p475_p2  ;;  %s492_s24 = sshll.u32 %s4324_s23, 4  ;;  %s493_s24 = int_to_ptr.vmem [resolvable:$true] %s492_s24 }
  0x21   : > { %s5384_s4 = sld [smem:[#allocation38_spill]]  ;;  %s4325_s21 = smov [#allocation10]  }
  0x22   : > { %p3754_p5 = pneg %p4477_p3  ;;  %s5353_s23 = smov 64  }
  0x23   : > { %s5355_s17 = smov 4   ;;  %s5386_s8 = sld [smem:[#allocation40_spill]] }
  0x24   : > { %s490_s22 = sshll.u32 %s5382_s3, 4  ;;  %p4489_p6 = pnand %p3754_p5, %p75_p1  ;;  %s491_s22 = int_to_ptr.hbm [resolvable:$true] %s490_s22 }
  0x25   : > { %s503_s3 = sshll.u32 %s4325_s21, 4  ;;  %s4328_s30 = smov [#allocation13]   ;;  %s504_s3 = int_to_ptr.vmem [resolvable:$true] %s503_s3 }
  0x26   : > { %3757 = dma.hbm_to_vmem [thread:$0]  (!%p4489_p6), %s491_s22, 16, %s493_s24, [#allocation8]  }
  0x27   : > { %s501_s18 = sshll.u32 %s5384_s4, 4  ;;  %s537_s15 = sshll.u32 %s4328_s30, 4  ;;  %s502_s18 = int_to_ptr.hbm [resolvable:$true] %s501_s18  ;;  %s538_s15 = int_to_ptr.vmem [resolvable:$true] %s537_s15 }
  0x28   : > { %3760 = dma.hbm_to_vmem [thread:$0]  (!%p4489_p6), %s502_s18, 1024, %s504_s3, [#allocation11], %s5353_s23, %s5353_s23, %s5355_s17  }
  0x29   : > { %s535_s4 = sshll.u32 %s5386_s8, 4  ;;  %s5387_s14 = sld [smem:[#allocation44_spill]]  ;;  %s536_s4 = int_to_ptr.hbm [resolvable:$true] %s535_s4 }
  0x2a   : > { %3766 = dma.hbm_to_vmem [thread:$0]  (!%p4489_p6), %s536_s4, 1024, %s538_s15, [#allocation14], %s5353_s23, %s5353_s23, %s5355_s17  }
  0x2b   : > { %s4329_s3 = smov [#allocation16]   ;;  %s5356_s24 = smov 128  }
  0x2c   : > { %s577_s18 = sshll.u32 %s4329_s3, 4  ;;  %s5357_s25 = smov 8   ;;  %s578_s18 = int_to_ptr.vmem [resolvable:$true] %s577_s18 }
  0x2d   : > { %s5388_s6 = sld [smem:[#allocation39_spill]]  ;;  %s4332_s21 = smov [#allocation12]  }
  0x2e   : > { %s520_s4 = sshll.u32 %s4332_s21, 4  ;;  %s5389_s10 = sld [smem:[#allocation41_spill]]  ;;  %s521_s4 = int_to_ptr.vmem [resolvable:$true] %s520_s4 }
  0x2f   : > { %s575_s22 = sshll.u32 %s5387_s14, 4  ;;  %s5390_s8 = smov 64   ;;  %s576_s22 = int_to_ptr.hbm [resolvable:$true] %s575_s22 }
  0x30   : > { %3772 = dma.hbm_to_vmem [thread:$0]  (!%p4489_p6), %s576_s22, 2048, %s578_s18, [#allocation17], %s5356_s24, %s5356_s24, %s5357_s25  }
  0x31   : > { %s4333_s22 = smov [#allocation15]   ;;  %s5391_s16 = sld [smem:[#allocation46_spill]] }
  0x32   : > { %s554_s18 = sshll.u32 %s4333_s22, 4  ;;  %s3309_s15 = sadd.s32 4294967294, %s4322_s19   ;;  %s555_s18 = int_to_ptr.vmem [resolvable:$true] %s554_s18 }
  0x33   : > { %s518_s26 = sshll.u32 %s5388_s6, 4  ;;  %s52_s3 = sadd.s32 1, %s4318_s0  ;;  %s519_s26 = int_to_ptr.hbm [resolvable:$true] %s518_s26 }
  0x34   : > { %s552_s23 = sshll.u32 %s5389_s10, 4  ;;  %s61_s22 = sadd.s32 1, %s4310_s29  ;;  %s553_s23 = int_to_ptr.hbm [resolvable:$true] %s552_s23 }
  0x35   : > { %3763 = dma.hbm_to_vmem [thread:$0]  (!%p4489_p6), %s519_s26, 1024, %s521_s4, [#allocation11], %s5390_s8, %s5390_s8, %s5355_s17  }
  0x36   : > { %3769 = dma.hbm_to_vmem [thread:$0]  (!%p4489_p6), %s553_s23, 1024, %s555_s18, [#allocation14], %s5390_s8, %s5390_s8, %s5355_s17  }
  0x37   : > { %s592_s21 = sshll.u32 %s5391_s16, 4  ;;  %s4334_s26 = smov [#allocation18]   ;;  %s593_s21 = int_to_ptr.hbm [resolvable:$true] %s592_s21 }
  0x38   : > { %s594_s4 = sshll.u32 %s4334_s26, 4  ;;  %p54_p7 = scmp.ge.s32.totalorder %s52_s3, 2  ;;  %s595_s4 = int_to_ptr.vmem [resolvable:$true] %s594_s4 }
  0x39   : > { %3775 = dma.hbm_to_vmem [thread:$0]  (!%p4489_p6), %s593_s21, 2048, %s595_s4, [#allocation17], %s5390_s8, %s5390_s8, %s5355_s17  }
  0x3a   : > { %p68_p8 = scmp.ne.s32.totalorder %s4310_s29, %s4306_s28  ;;  %p69_p9 = scmp.eq.s32.totalorder %s4322_s19, 0 }
  0x3b   : > { %p74_p10 = scmp.ne.s32.totalorder %s4306_s28, %s4302_s27  ;;  %s5425_s3 = smov (%p54_p7, %s52_s3), 0 }
  0x3c   : > { %5392 = sst [smem:[#allocation30_spill]] %s5425_s3  ;;  %p4550_p11 = por %p69_p9, %p68_p8 }
  0x3d   : > { %p4556_p12 = por %p75_p1, %p74_p10  ;;  %s56_s18 = ssub.s32 %s4318_s0, %s5425_s3 }
  0x3e   : > { %p462_p13 = scmp.eq.s32.totalorder %s4469_s1, 1  ;;  %p59_p0 = scmp.eq.s32.totalorder %s56_s18, 0 }
  0x3f   : > { %p468_p2 = scmp.eq.s32.totalorder %s3309_s15, 1  ;;  %p3794_p6 = scmp.lt.s32.totalorder %s4322_s19, 2 }
  0x40   : > { %p4563_p5 = por %p462_p13, %p68_p8  ;;  %s611_s26 = sand.u32 1, %s4310_s29  }
  0x41   : > { %s4569_s30 = scalar_select %p59_p0, %s4310_s29, %s61_s22  }
  0x42   : > { %s5395_s13 = scalar_select %p4563_p5, 1, 0 }
  0x43   : > { %5397 = sst [smem:[#allocation32_spill]] %s4569_s30  ;;  %p4571_p7 = por %p468_p2, %p74_p10 }
  0x44   : > { %5396 = sst [smem:[#allocation31_spill]] %s5395_s13  ;;  %s3319_s4 = sshll.u32 %s611_s26, 4 }
  0x45   : > { %s5398_s21 = scalar_select %p4571_p7, 1, 0 }
  0x46   : > { %s3641_s17 = sshll.u32 %s4318_s0, 4  ;;  %s5400_s18 = sld [smem:[#allocation34_spill]] }
  0x47   : > { %5399 = sst [smem:[#allocation33_spill]] %s5398_s21  ;;  %s615_s15 = scalar_lea.vmem [#allocation4], %s3319_s4 }
  0x48   : > { %s625_s10 = sshll.u32 %s615_s15, 4  ;;  %p3777_p8 = pnand %p3794_p6, %p4550_p11  ;;  %s626_s10 = int_to_ptr.vmem [resolvable:$true] %s625_s10 }
  0x49   : > { %s635_s22 = sand.u32 1, %s4322_s19   ;;  %s3322_s16 = sshll.u32 %s611_s26, 3 }
  0x4a   : > { %s612_s3 = scalar_lea.sflag [#allocation5], %s611_s26  ;;  %s5401_s30 = smov 8  }
  0x4b   : > { %s5402_s27 = smov 128   ;;  %s3642_s29 = sshll.u32 %s4318_s0, 3 }
  0x4c   : > { %s622_s6 = scalar_lea.hbm %s5400_s18, %s3641_s17  ;;  %s5403_s12 = sld [smem:[#allocation35_spill]] }
  0x4d   : > { %s623_s14 = sshll.u32 %s622_s6, 4  ;;  %s639_s17 = scalar_lea.vmem [#allocation7], %s3322_s16  ;;  %s624_s14 = int_to_ptr.hbm [resolvable:$true] %s623_s14 }
  0x4e   : > { %3779 = dma.hbm_to_vmem [thread:$0]  (!%p3777_p8), %s624_s14, 256, %s626_s10, %s612_s3, %s5402_s27, %s5402_s27, %s5401_s30  }
  0x4f   : > { %s647_s25 = sshll.u32 %s639_s17, 4  ;;  %s636_s6 = scalar_lea.sflag [#allocation8], %s635_s22  ;;  %s648_s25 = int_to_ptr.vmem [resolvable:$true] %s647_s25 }
  0x50   : > { %s5404_s20 = smov 4   ;;  %659 = sbr.rel (%p4477_p3) target bundleno = 2064 (0x810), region = 92 }
  0x51   : > { %s4596_s10 = sand.u32 (!%p4477_p3), 1, %s4306_s28  }
  0x52   : > { %s644_s24 = scalar_lea.hbm %s5403_s12, %s3642_s29  ;;  %s3326_s12 = sshll.u32 (!%p4477_p3), %s4596_s10, 4 }
  0x53   : > { %s645_s4 = sshll.u32 %s644_s24, 4  ;;  %s662_s14 = scalar_lea.sflag (!%p4477_p3), [#allocation5], %s4596_s10  ;;  %s646_s4 = int_to_ptr.hbm [resolvable:$true] %s645_s4 }
  0x54   : > { %3782 = dma.hbm_to_vmem [thread:$0]  (!%p3777_p8), %s646_s4, 128, %s648_s25, %s636_s6, %s5390_s8, %s5390_s8, %s5404_s20  }
  0x55   : > { %s4602_s16 = scalar_lea.vmem [#allocation4], %s3326_s12 }
  0x56   : > { %4273 = dma.done.wait (%p4556_p12), %s662_s14, 256  }
  0x57   : > { %4275 = vsyncadd (%p4556_p12), %s662_s14, 4294967040  ;;  %s671_s8 = sand.u32 1, %s4469_s1   ;;  %s3327_s27 = sshll.u32 %s4596_s10, 3 }
  0x58   : > { %s672_s29 = scalar_lea.sflag [#allocation8], %s671_s8  ;;  %s675_s2 = scalar_lea.vmem [#allocation7], %s3327_s27 }
  0x59   : > { %4277 = dma.done.wait (%p4556_p12), %s672_s29, 128  }
  0x5a   : > { %4279 = vsyncadd (%p4556_p12), %s672_s29, 4294967168 }
  0x5b   : > { %4281 = dma.done.wait (%p75_p1), [#allocation8], 16  }
  0x5c   : > { %4283 = vsyncadd (%p75_p1), [#allocation8], 4294967280 }
  0x5d   : > { %4285 = dma.done.wait (%p75_p1), [#allocation11], 2048  }
  0x5e   : > { %4287 = vsyncadd (%p75_p1), [#allocation11], 4294965248 }
  0x5f   : > { %4289 = dma.done.wait (%p75_p1), [#allocation14], 2048  }
  0x60   : > { %4291 = vsyncadd (%p75_p1), [#allocation14], 4294965248 }
  0x61   : > { %4293 = dma.done.wait (%p75_p1), [#allocation17], 4096  }
  0x62   : > { %4295 = vsyncadd (%p75_p1), [#allocation17], 4294963200  ;;  %v772_v0 = vld [vmem:[%s4602_s16] sm:$0xff]  ;;  %v773_v3 = vld [vmem:[%s4602_s16 + $0x8] sm:$0xff]  ;;  %v4335_v5 = vmov 128.0   ;;  %s5405_s23 = sld [smem:[#allocation36_spill]] }
  0x63   : > { %v3717_v1 = vld [vmem:[%s675_s2] sm:$0xff]   ;;  %1534 = vadd.xlane.f32.xlu1 %v772_v0  ;;  %3894 = vrcp.f32 %v4335_v5  ;;  %v3663_v37 = vld [vmem:[#allocation10 + $0x20] sm:$0xff]  ;;  %s4336_s18 = smov 96   ;;  %s4337_s15 = smov 32   ;;  %vm1063_vm13 = vcmask 1047556   ;;  %vm1265_vm14 = vcmask 257024  }
  0x64   : > { %v3718_v2 = vunpack.c.l.bf16 %v3717_v1  ;;  %v3719_v4 = vunpack.c.h.bf16 %v3717_v1  ;;  %v3666_v28 = vld [vmem:[#allocation10 + $0x38] sm:$0xff]  ;;  %v3665_v31 = vld [vmem:[#allocation10 + $0x30] sm:$0xff]  ;;  %v3664_v34 = vld [vmem:[#allocation10 + $0x28] sm:$0xff]  ;;  %s4338_s22 = smov 64   ;;  %vm1942_vm15 = vcmask 261120   ;;  %s5406_s14 = sld [smem:[#allocation42_spill]] }
  0x65   : > { %1659 = vmatpush.bf16.msra.mxu2 %v3666_v28  ;;  %v3650_v29 = vld [vmem:[#allocation12 + $0x38] sm:$0xff]  ;;  %v3649_v32 = vld [vmem:[#allocation12 + $0x30] sm:$0xff]  ;;  %v3648_v35 = vld [vmem:[#allocation12 + $0x28] sm:$0xff]  ;;  %s5407_s27 = sld [smem:[#allocation43_spill]]  ;;  %s768_s26 = scalar_lea.vmem [#allocation19], %s3326_s12 }
  0x66   : > { %792 = vadd.xlane.f32.xlu0 %v3718_v2  ;;  %v3658_v30 = vld [vmem:[#allocation13 + $0x38] sm:$0xff]  ;;  %917 = vmatpush.bf16.msra.mxu0 %v3650_v29  ;;  %v3657_v33 = vld [vmem:[#allocation13 + $0x30] sm:$0xff]  ;;  %v3656_v36 = vld [vmem:[#allocation13 + $0x28] sm:$0xff]  ;;  %s5408_s1 = sld [smem:[#allocation45_spill]]  ;;  %s3129_s25 = sshll.u32 %s768_s26, 4  ;;  %s3130_s25 = int_to_ptr.vmem [resolvable:$true] %s3129_s25 }
  0x67   : > { %998 = vmatpush.bf16.msra.mxu1 %v3658_v30  ;;  %v3647_v38 = vld [vmem:[#allocation12 + $0x20] sm:$0xff]  ;;  %v3662_v40 = vld [vmem:[#allocation10 + $0x18] sm:$0xff]  ;;  %v3661_v43 = vld [vmem:[#allocation10 + $0x10] sm:$0xff]  ;;  %s5411_s3 = sld [smem:[#allocation29_spill]]  ;;  %s3115_s6 = scalar_lea.sflag [#allocation6], %s4596_s10 }
  0x68   : > { %v3655_v39 = vld [vmem:[#allocation13 + $0x20] sm:$0xff]  ;;  %v3646_v41 = vld [vmem:[#allocation12 + $0x18] sm:$0xff]  ;;  %v3645_v44 = vld [vmem:[#allocation12 + $0x10] sm:$0xff]  ;;  %s5412_s30 = sld [smem:[#allocation47_spill]] }
  0x69   : > { %v3895_v6 = vpop.eup %3894  ;;  %1660 = vmatpush.bf16.msra.mxu2 %v3665_v31  ;;  %v3654_v42 = vld [vmem:[#allocation13 + $0x18] sm:$0xff]  ;;  %v3653_v45 = vld [vmem:[#allocation13 + $0x10] sm:$0xff]  ;;  %v3660_v46 = vld [vmem:[#allocation10 + $0x8] sm:$0xff]  ;;  %s5414_s24 = sld [smem:[#allocation48_spill]] }
  0x6a   : > { %v797_v7 = vmul.f32 128.0, %v3895_v6  ;;  %vm801_vm0 = vweird.f32 %v3895_v6  ;;  %918 = vmatpush.bf16.msra.mxu0 %v3649_v32  ;;  %v3644_v47 = vld [vmem:[#allocation12 + $0x8] sm:$0xff]  ;;  %v3659_v50 = vld [vmem:[#allocation10] sm:$0xff] }
  0x6b   : > { %1536 = vadd.xlane.f32.xlu1 %v773_v3  ;;  %999 = vmatpush.bf16.msra.mxu1 %v3657_v33  ;;  %v3652_v48 = vld [vmem:[#allocation13 + $0x8] sm:$0xff]  ;;  %v3643_v53 = vld [vmem:[#allocation12] sm:$0xff] }
  0x6c   : > { %v798_v8 = vsub.f32 1.0, %v797_v7  ;;  %v3651_v54 = vld [vmem:[#allocation13] sm:$0xff]  ;;  %v3885_v28 = vld [vmem:[%s5405_s23] ss:$0 sm:$0xff] }
  0x6d   : > { %1661 = vmatpush.bf16.msra.mxu2 %v3664_v34  ;;  %s3715_s21 = sshll.u32 %s5411_s3, 4 }
  0x6e   : > { %794 = vadd.xlane.f32.xlu0 %v3719_v4  ;;  %v799_v9 = vmul.f32 %v3895_v6, %v798_v8  ;;  %919 = vmatpush.bf16.msra.mxu0 %v3648_v35  ;;  %v3886_v35 = vld [vmem:[#allocation9] ss:$0 sm:$0xff] }
  0x6f   : > { %1000 = vmatpush.bf16.msra.mxu1 %v3656_v36  ;;  %s3128_s17 = scalar_lea.hbm %s5414_s24, %s3715_s21  ;;  %s4240_s8 = scalar_lea.hbm %s5414_s24, 32 }
  0x70   : > { %v800_v10 = vadd.f32 %v3895_v6, %v799_v9  ;;  %s3131_s4 = sshll.u32 %s3128_s17, 4  ;;  %s3132_s4 = int_to_ptr.hbm [resolvable:$true] %s3131_s4 }
  0x71   : > { %1662 = vmatpush.bf16.msra.mxu2 %v3663_v37  ;;  %s4234_s20 = sshra.s32 %s3132_s4, 4  ;;  %s4235_s20 = int_to_ptr.hbm [resolvable:$true] %s4234_s20 }
  0x72   : > { %v4632_v11 = vsel %vm801_vm0, %v3895_v6, %v800_v10  ;;  %920 = vmatpush.bf16.msra.mxu0 %v3647_v38  ;;  %vm2047_vm0 = vcmask 130048   ;;  %s4236_s12 = scalar_lea.hbm %s4235_s20, 16  ;;  %p4241_p10 = scmp.lt.s32.totalorder %s4235_s20, %s5414_s24 }
  0x73   : > { %1001 = vmatpush.bf16.msra.mxu1 %v3655_v39  ;;  %p4237_p1 = scmp.ne.s32.totalorder %s4235_s20, %s4236_s12  ;;  %p4242_p11 = scmp.lt.s32.totalorder %s4240_s8, %s4236_s12 }
  0x75   : > { %1663 = vmatpush.bf16.msra.mxu2 %v3662_v40  ;;  %p4238_p3 = pnand %p4237_p1, %p4563_p5  ;;  %p4243_p12 = por %p4242_p11, %p4241_p10 }
  0x76   : > { %921 = vmatpush.bf16.msra.mxu0 %v3646_v41 }
  0x77   : > { %1002 = vmatpush.bf16.msra.mxu1 %v3654_v42  ;;  %p4239_p9 = pneg %p4238_p3 }
  0x79   : > { %1664 = vmatpush.bf16.msra.mxu2 %v3661_v43  ;;  %p4244_p13 = pnand %p4243_p12, %p4239_p9 }
  0x7a   : > { %922 = vmatpush.bf16.msra.mxu0 %v3645_v44 }
  0x7b   : > { %1003 = vmatpush.bf16.msra.mxu1 %v3653_v45 }
  0x7d   : > { %1665 = vmatpush.bf16.msra.mxu2 %v3660_v46 }
  0x7e   : > { %923 = vmatpush.bf16.msra.mxu0 %v3644_v47 }
  0x7f   : > { %1004 = vmatpush.bf16.msra.mxu1 %v3652_v48 }
  0x81   : > { %1666 = vmatpush.bf16.msra.mxu2 %v3659_v50 }
  0x82   : > { %924 = vmatpush.bf16.msra.mxu0 %v3643_v53 }
  0x83   : > { %1005 = vmatpush.bf16.msra.mxu1 %v3651_v54 }
  0xd6   : > { %v1535_v12 = vpop.xlane.xlu1 %1534 }
  0xd7   : > { %v1545_v13 = vmul.f32 %v1535_v12, %v4632_v11 }
  0xd9   : > { %v793_v14 = vpop.xlane.xlu0 %792  ;;  %v4635_v15 = vsub.f32 %v772_v0, %v1545_v13 }
  0xda   : > { %v803_v16 = vmul.f32 %v4632_v11, %v793_v14 }
  0xdb   : > { %v1549_v17 = vmul.f32 %v4635_v15, %v4635_v15 }
  0xdc   : > { %v4640_v18 = vsub.f32 %v3718_v2, %v803_v16 }
  0xdd   : > { %1551 = vadd.xlane.f32.xlu0 %v1549_v17 }
  0xde   : > { %v807_v19 = vmul.f32 %v4640_v18, %v4640_v18  ;;  %v1537_v20 = vpop.xlane.xlu1 %1536 }
  0xdf   : > { %v1546_v21 = vmul.f32 %v1537_v20, %v4632_v11 }
  0xe0   : > { %809 = vadd.xlane.f32.xlu2 %v807_v19 }
  0xe1   : > { %v795_v22 = vpop.xlane.xlu0 %794  ;;  %v4645_v23 = vsub.f32 %v773_v3, %v1546_v21 }
  0xe2   : > { %v804_v24 = vmul.f32 %v4632_v11, %v795_v22 }
  0xe3   : > { %v1550_v26 = vmul.f32 %v4645_v23, %v4645_v23 }
  0xe4   : > { %v4648_v25 = vsub.f32 %v3719_v4, %v804_v24 }
  0xe5   : > { %1553 = vadd.xlane.f32.xlu1 %v1550_v26 }
  0xe6   : > { %v808_v27 = vmul.f32 %v4648_v25, %v4648_v25 }
  0xe8   : > { %811 = vadd.xlane.f32.xlu2 %v808_v27 }
 0x150   : > { %v1552_v49 = vpop.xlane.xlu0 %1551 }
 0x151   : > { %v1555_v51 = vmul.f32 %v1552_v49, %v4632_v11 }
 0x153   : > { %v810_v52 = vpop.xlane.xlu2 %809  ;;  %v1557_v55 = vadd.f32 1e-05, %v1555_v51 }
 0x154   : > { %v813_v56 = vmul.f32 %v810_v52, %v4632_v11 }
 0x155   : > { %3896 = vrsqrt.f32 %v1557_v55  ;;  %vm1565_vm2 = vweird.f32 %v1557_v55 }
 0x156   : > { %v815_v57 = vadd.f32 1e-05, %v813_v56 }
 0x158   : > { %3898 = vrsqrt.f32 %v815_v57  ;;  %v1554_v58 = vpop.xlane.xlu1 %1553  ;;  %vm823_vm5 = vweird.f32 %v815_v57 }
 0x159   : > { %v1556_v59 = vmul.f32 %v1554_v58, %v4632_v11 }
 0x15b   : > { %v812_v60 = vpop.xlane.xlu2 %811  ;;  %v3897_v61 = vpop.eup %3896  ;;  %v1558_v62 = vadd.f32 1e-05, %v1556_v59 }
 0x15c   : > { %v814_v63 = vmul.f32 %v812_v60, %v4632_v11  ;;  %v1560_v0 = vmul.f32 %v3897_v61, %v1557_v55  ;;  %vm1566_vm1 = vweird.f32 %v3897_v61  ;;  %v3888_v60 = vld [vmem:[%s5342_s9] ss:$0 sm:$0xff] }
 0x15d   : > { %3900 = vrsqrt.f32 %v1558_v62  ;;  %vm1567_vm4 = vmor %vm1565_vm2, %vm1566_vm1  ;;  %vm1575_vm8 = vweird.f32 %v1558_v62  ;;  %vm2503_vm1 = vcmask 523264   ;;  %vm2506_vm2 = vcmask 785408  }
 0x15e   : > { %v3899_v1 = vpop.eup %3898  ;;  %v816_v2 = vadd.f32 1e-05, %v814_v63  ;;  %v1561_v3 = vmul.f32 %v3897_v61, %v1560_v0 }
 0x15f   : > { %v818_v4 = vmul.f32 %v3899_v1, %v815_v57  ;;  %vm824_vm3 = vweird.f32 %v3899_v1 }
 0x160   : > { %3902 = vrsqrt.f32 %v816_v2  ;;  %v1562_v5 = vmul.f32 0.5, %v1561_v3  ;;  %vm825_vm6 = vmor %vm823_vm5, %vm824_vm3  ;;  %vm833_vm11 = vweird.f32 %v816_v2 }
 0x161   : > { %v819_v6 = vmul.f32 %v3899_v1, %v818_v4  ;;  %v4339_v4 = vmov 1983009808  }
 0x162   : > { %v1563_v7 = vsub.f32 1.5, %v1562_v5  ;;  %v1054_v5 = vunpack.c.l.s4 %v4339_v4 }
 0x163   : > { %v820_v8 = vmul.f32 0.5, %v819_v6  ;;  %v3901_v9 = vpop.eup %3900 }
 0x164   : > { %v1564_v10 = vmul.f32 %v3897_v61, %v1563_v7  ;;  %v1570_v13 = vmul.f32 %v3901_v9, %v1558_v62  ;;  %vm1576_vm7 = vweird.f32 %v3901_v9 }
 0x165   : > { %v821_v12 = vsub.f32 1.5, %v820_v8  ;;  %vm1577_vm10 = vmor %vm1575_vm8, %vm1576_vm7 }
 0x166   : > { %v3903_v14 = vpop.eup %3902  ;;  %v1571_v17 = vmul.f32 %v3901_v9, %v1570_v13  ;;  %v1568_v22 = vsel %vm1567_vm4, %v3897_v61, %v1564_v10 }
 0x167   : > { %v822_v16 = vmul.f32 %v3899_v1, %v821_v12  ;;  %v828_v19 = vmul.f32 %v3903_v14, %v816_v2  ;;  %v1579_v29 = vmul.f32 %v1568_v22, %v4635_v15  ;;  %vm834_vm9 = vweird.f32 %v3903_v14 }
 0x168   : > { %v1572_v20 = vmul.f32 0.5, %v1571_v17  ;;  %vm835_vm12 = vmor %vm833_vm11, %vm834_vm9 }
 0x169   : > { %v829_v21 = vmul.f32 %v3903_v14, %v828_v19  ;;  %v826_v27 = vsel %vm825_vm6, %v3899_v1, %v822_v16  ;;  %v1584_v37 = vmul.f32 %v3885_v28, %v1579_v29 }
 0x16a   : > { %v1573_v24 = vsub.f32 1.5, %v1572_v20  ;;  %v837_v32 = vmul.f32 %v826_v27, %v4640_v18 }
 0x16b   : > { %v830_v26 = vmul.f32 0.5, %v829_v21  ;;  %v1589_v41 = vadd.f32 %v3886_v35, %v1584_v37 }
 0x16c   : > { %v1574_v30 = vmul.f32 %v3901_v9, %v1573_v24  ;;  %v842_v15 = vmul.f32 %v3885_v28, %v837_v32 }
 0x16d   : > { %v831_v31 = vsub.f32 1.5, %v830_v26 }
 0x16e   : > { %v1578_v34 = vsel %vm1577_vm10, %v3901_v9, %v1574_v30  ;;  %v847_v45 = vadd.f32 %v3886_v35, %v842_v15  ;;  %v4717_v9 = vunpack.c.0.s8 %v1054_v5 }
 0x16f   : > { %v832_v33 = vmul.f32 %v3903_v14, %v831_v31  ;;  %v1580_v36 = vmul.f32 %v1578_v34, %v4645_v23  ;;  %v3887_v23 = vld [vmem:[%s5340_s7] ss:$0 sm:$0xff] }
 0x171   : > { %v836_v38 = vsel %vm835_vm12, %v3903_v14, %v832_v33  ;;  %v1585_v39 = vmul.f32 %v3885_v28, %v1580_v36  ;;  %v4340_v14 = vmov 1934713408  }
 0x172   : > { %v838_v40 = vmul.f32 %v836_v38, %v4648_v25  ;;  %v3889_v25 = vld [vmem:[%s5338_s5] ss:$0 sm:$0xff]  ;;  %v1068_v16 = vunpack.c.l.s4 %v4340_v14 }
 0x173   : > { %v1590_v42 = vadd.f32 %v3886_v35, %v1585_v39 }
 0x174   : > { %v843_v43 = vmul.f32 %v3885_v28, %v838_v40  ;;  %v4721_v30 = vunpack.c.0.s8 %v1068_v16 }
 0x175   : > { %v1591_v44 = vpack.c.bf16 %v1590_v42, %v1589_v41 }
 0x176   : > { %v848_v46 = vadd.f32 %v3886_v35, %v843_v43 }
 0x177   : > { %1667 = vmatmul.bf16.vlgmr.msra.gmra.mxu2 %v1591_v44 }
 0x178   : > { %v849_v18 = vpack.c.bf16 %v848_v46, %v847_v45 }
 0x17a   : > { %925 = vmatmul.bf16.vlgmr.msra.gmra.mxu0 %v849_v18  ;;  %1006 = vmatmul.bf16.vlgmr.msra.gmra.mxu1 %v849_v18 }
 0x1f7   : > { %v926_v47 = vpop.f32.mrf.mxu0  ;;  %v1007_v58 = vpop.f32.mrf.mxu1 }
 0x1f8   : > { %v927_v48 = vadd.f32 %v3887_v23, %v926_v47  ;;  %v1008_v61 = vadd.f32 %v3888_v60, %v1007_v58 }
 0x1fa   : > { %v1012_v49 = vpack.c.bf16 %v927_v48, %v927_v48  ;;  %v1668_v50 = vpop.f32.mrf.mxu2  ;;  %v4695_v62 = vpack.c.bf16 %v1008_v61, %v1008_v61 }
 0x1fb   : > { %v1669_v51 = vadd.f32 %v3889_v25, %v1668_v50 }
 0x1fc   : > { %1016 = vrot.lane.b32.xlu2 %v1012_v49, %s4336_s18  ;;  %1024 = vrot.lane.b32.xlu0 %v1012_v49, %s4337_s15  ;;  %v1031_v7 = vshrl.u32 %v1012_v49, 16  ;;  %v1293_v37 = vshrl.u32 %v4695_v62, 16 }
 0x1fd   : > { %1020 = vrot.lane.b32.xlu1 %v1012_v49, %s4338_s22  ;;  %v4676_v55 = vpack.c.bf16 %v1669_v51, %v1669_v51 }
 0x1ff   : > { %v928_v52 = vpop.f32.mrf.mxu0  ;;  %v1009_v63 = vpop.f32.mrf.mxu1  ;;  %v1692_v36 = vshrl.u32 %v4676_v55, 16 }
 0x200   : > { %v929_v53 = vadd.f32 %v3887_v23, %v928_v52  ;;  %v1010_v0 = vadd.f32 %v3888_v60, %v1009_v63 }
 0x202   : > { %v4674_v54 = vpack.c.bf16 %v929_v53, %v929_v53  ;;  %v1670_v56 = vpop.f32.mrf.mxu2  ;;  %v4703_v1 = vpack.c.bf16 %v1010_v0, %v1010_v0 }
 0x203   : > { %v1671_v57 = vadd.f32 %v3889_v25, %v1670_v56 }
 0x204   : > { %1022 = vrot.lane.b32.xlu2 %v4674_v54, %s4338_s22  ;;  %1018 = vrot.lane.b32.xlu0 %v4674_v54, %s4336_s18  ;;  %v1043_v43 = vshrl.u32 %v4674_v54, 16  ;;  %v1305_v45 = vshrl.u32 %v4703_v1, 16 }
 0x205   : > { %1677 = vrot.lane.b32.xlu1 %v4676_v55, %s4336_s18  ;;  %v4684_v59 = vpack.c.bf16 %v1671_v57, %v1671_v57 }
 0x207   : > { %v1704_v44 = vshrl.u32 %v4684_v59, 16 }
 0x20c   : > { %1026 = vrot.lane.b32.xlu2 %v4674_v54, %s4337_s15  ;;  %1679 = vrot.lane.b32.xlu0 %v4684_v59, %s4336_s18 }
 0x20d   : > { %1683 = vrot.lane.b32.xlu1 %v4684_v59, %s4338_s22 }
 0x214   : > { %1685 = vrot.lane.b32.xlu0 %v4676_v55, %s4337_s15  ;;  %1681 = vrot.lane.b32.xlu2 %v4676_v55, %s4338_s22 }
 0x215   : > { %1278 = vrot.lane.b32.xlu1 %v4695_v62, %s4336_s18 }
 0x21c   : > { %1280 = vrot.lane.b32.xlu0 %v4703_v1, %s4336_s18  ;;  %1687 = vrot.lane.b32.xlu2 %v4684_v59, %s4337_s15 }
 0x21d   : > { %1284 = vrot.lane.b32.xlu1 %v4703_v1, %s4338_s22 }
 0x224   : > { %1286 = vrot.lane.b32.xlu0 %v4695_v62, %s4337_s15  ;;  %1282 = vrot.lane.b32.xlu2 %v4695_v62, %s4338_s22 }
 0x22c   : > { %1288 = vrot.lane.b32.xlu2 %v4703_v1, %s4337_s15 }
 0x256   : > { %v1017_v2 = vpop.permute.xlu2 %1016 }
 0x257   : > { %v1032_v6 = vshrl.u32 %v1017_v2, 16  ;;  %v1030_v10 = vpack.i.b16 %v1017_v2, %v1012_v49 }
 0x259   : > { %v1033_v12 = vpack.i.b16 %v1032_v6, %v1031_v7  ;;  %v1056_v17 = vperm.slane %v1030_v10, %v4717_v9 }
 0x25b   : > { %v1083_v22 = vperm.slane %v1033_v12, %v4717_v9  ;;  %v1065_v31 = vrot.slane %v1056_v17, 4 }
 0x25d   : > { %v1091_v35 = vrot.slane %v1083_v22, 4 }
 0x25e   : > { %v1023_v3 = vpop.permute.xlu2 %1022 }
 0x25f   : > { %v1049_v19 = vshrl.u32 %v1023_v3, 16 }
 0x266   : > { %v1027_v8 = vpop.permute.xlu2 %1026 }
 0x267   : > { %v1050_v13 = vshrl.u32 %v1027_v8, 16  ;;  %v1048_v20 = vpack.i.b16 %v1027_v8, %v1023_v3 }
 0x269   : > { %v1051_v27 = vpack.i.b16 %v1050_v13, %v1049_v19  ;;  %v1114_v32 = vperm.slane %v1048_v20, %v4717_v9 }
 0x26b   : > { %v4728_v38 = vperm.slane %v1051_v27, %v4717_v9  ;;  %v1115_v46 = vrot.slane %v1114_v32, 4 }
 0x26d   : > { %v1141_v52 = vrot.slane %v4728_v38, 4 }
 0x26e   : > { %v1025_v21 = vpop.permute.xlu0 %1024  ;;  %v4732_v41 = vpop.permute.xlu2 %1681 }
 0x26f   : > { %v1038_v24 = vshrl.u32 %v1025_v21, 16  ;;  %v1021_v26 = vpop.permute.xlu1 %1020  ;;  %v1698_v53 = vshrl.u32 %v4732_v41, 16 }
 0x270   : > { %v1036_v28 = vpack.i.b16 %v1025_v21, %v1021_v26  ;;  %v1037_v29 = vshrl.u32 %v1021_v26, 16 }
 0x272   : > { %v1039_v33 = vpack.i.b16 %v1038_v24, %v1037_v29  ;;  %v1061_v34 = vperm.slane %v1036_v28, %v4717_v9 }
 0x274   : > { %v1062_v39 = vrot.slane %v1061_v34, 4  ;;  %v1066_v40 = vsel %vm1063_vm13, %v1061_v34, %v1065_v31  ;;  %v1088_v15 = vperm.slane %v1039_v33, %v4717_v9 }
 0x275   : > { %v1074_v42 = vperm.slane %v1066_v40, %v4721_v30 }
 0x276   : > { %v1064_v18 = vsel %vm1063_vm13, %v1062_v39, %v1056_v17  ;;  %v1089_v23 = vrot.slane %v1088_v15, 4  ;;  %v1092_v47 = vsel %vm1063_vm13, %v1088_v15, %v1091_v35  ;;  %v1019_v48 = vpop.permute.xlu0 %1018  ;;  %v4765_v31 = vpop.permute.xlu2 %1687 }
 0x277   : > { %v1070_v49 = vperm.slane %v1064_v18, %v4721_v30  ;;  %v1077_v25 = vrot.slane %v1074_v42, 4  ;;  %v1100_v50 = vperm.slane %v1092_v47, %v4721_v30  ;;  %v1042_v51 = vpack.i.b16 %v1019_v48, %v4674_v54  ;;  %v1678_v58 = vpop.permute.xlu1 %1677 }
 0x278   : > { %v1090_v56 = vsel %vm1063_vm13, %v1089_v23, %v1083_v22  ;;  %v1044_v57 = vshrl.u32 %v1019_v48, 16  ;;  %v1691_v8 = vpack.i.b16 %v1678_v58, %v4676_v55  ;;  %v1693_v33 = vshrl.u32 %v1678_v58, 16 }
 0x279   : > { %v1075_v60 = vrot.slane %v1070_v49, 4  ;;  %v1078_v61 = vsel %vm1063_vm13, 0, %v1077_v25  ;;  %v1096_v63 = vperm.slane %v1090_v56, %v4721_v30  ;;  %v1103_v0 = vrot.slane %v1100_v50, 4 }
 0x27a   : > { %v1157_v2 = vsel %vm1063_vm13, %v1077_v25, %v1070_v49  ;;  %v1162_v3 = vrot.slane %v1078_v61, 4  ;;  %v1045_v4 = vpack.i.b16 %v1044_v57, %v1043_v43  ;;  %v1109_v54 = vperm.slane %v1042_v51, %v4717_v9 }
 0x27b   : > { %v1076_v5 = vsel %vm1063_vm13, 0, %v1075_v60  ;;  %v1101_v6 = vrot.slane %v1096_v63, 4  ;;  %v1104_v7 = vsel %vm1063_vm13, 0, %v1103_v0  ;;  %v1176_v12 = vsel %vm1063_vm13, %v1103_v0, %v1096_v63 }
 0x27c   : > { %v1163_v10 = vsel %vm1063_vm13, %v1162_v3, %v1076_v5  ;;  %v1181_v13 = vrot.slane %v1104_v7, 4  ;;  %v1116_v14 = vsel %vm1063_vm13, %v1115_v46, %v1109_v54  ;;  %v1161_v17 = vperm.slane %v1157_v2, %v4717_v9 }
 0x27d   : > { %v1102_v16 = vsel %vm1063_vm13, 0, %v1101_v6  ;;  %v1167_v19 = vperm.slane %v1163_v10, %v4717_v9  ;;  %v1117_v20 = vrot.slane %v1109_v54, 4  ;;  %v1180_v21 = vperm.slane %v1176_v12, %v4717_v9 }
 0x27e   : > { %v1182_v22 = vsel %vm1063_vm13, %v1181_v13, %v1102_v16  ;;  %v1122_v24 = vperm.slane %v1116_v14, %v4721_v30  ;;  %v1135_v26 = vperm.slane %v1045_v4, %v4717_v9  ;;  %v4772_v46 = vperm.slane %v1691_v8, %v4717_v9  ;;  %v1680_v18 = vpop.permute.xlu0 %1679 }
 0x27f   : > { %v1168_v27 = vrot.slane %v1167_v19, 4  ;;  %v1186_v28 = vperm.slane %v1182_v22, %v4717_v9  ;;  %v1118_v29 = vsel %vm1063_vm13, %v1114_v32, %v1117_v20  ;;  %v1711_v48 = vshrl.u32 %v4765_v31, 16  ;;  %v1684_v12 = vpop.permute.xlu1 %1683 }
 0x280   : > { %v1126_v34 = vperm.slane %v1118_v29, %v4721_v30  ;;  %v1127_v35 = vrot.slane %v1122_v24, 4  ;;  %v1142_v39 = vsel %vm1063_vm13, %v1141_v52, %v1135_v26  ;;  %v1143_v40 = vrot.slane %v1135_v26, 4 }
 0x281   : > { %v1169_v15 = vsel %vm1063_vm13, %v1168_v27, %v1161_v17  ;;  %v1187_v42 = vrot.slane %v1186_v28, 4  ;;  %v1148_v43 = vperm.slane %v1142_v39, %v4721_v30  ;;  %v1694_v51 = vpack.i.b16 %v1693_v33, %v1692_v36  ;;  %v4801_v28 = vpop.permute.xlu2 %1282 }
 0x282   : > { %v1173_v32 = vperm.slane %v1169_v15, %v4721_v30  ;;  %v1129_v23 = vrot.slane %v1126_v34, 4  ;;  %v1144_v47 = vsel %vm1063_vm13, %v4728_v38, %v1143_v40  ;;  %v1128_v57 = vsel %vm1063_vm13, 0, %v1127_v35 }
 0x283   : > { %v1188_v49 = vsel %vm1063_vm13, %v1187_v42, %v1180_v21  ;;  %v1152_v25 = vperm.slane %v1144_v47, %v4721_v30  ;;  %v1153_v50 = vrot.slane %v1148_v43, 4  ;;  %v1726_v63 = vrot.slane %v4772_v46, 4 }
 0x284   : > { %v1174_v52 = vrot.slane %v1173_v32, 4  ;;  %v1192_v56 = vperm.slane %v1188_v49, %v4721_v30  ;;  %v1130_v58 = vsel %vm1063_vm13, 0, %v1129_v23  ;;  %v1237_v60 = vshrl.u32 %v1173_v32, 16 }
 0x285   : > { %v1155_v61 = vrot.slane %v1152_v25, 4  ;;  %v1200_v38 = vrot.slane %v1130_v58, 4  ;;  %v1154_v55 = vsel %vm1063_vm13, 0, %v1153_v50  ;;  %v1195_v54 = vsel %vm1063_vm13, %v1129_v23, %v1122_v24 }
 0x286   : > { %v1175_v0 = vsel %vm1063_vm13, 0, %v1174_v52  ;;  %v1193_v2 = vrot.slane %v1192_v56, 4  ;;  %v1235_v3 = vpack.i.b16 %v1192_v56, %v1173_v32  ;;  %v1238_v4 = vshrl.u32 %v1192_v56, 16  ;;  %v1686_v33 = vpop.permute.xlu0 %1685 }
 0x287   : > { %v1156_v36 = vsel %vm1063_vm13, 0, %v1155_v61  ;;  %v1201_v5 = vsel %vm1063_vm13, %v1200_v38, %v1128_v57  ;;  %v1214_v10 = vsel %vm1063_vm13, %v1155_v61, %v1148_v43  ;;  %v1245_v14 = vshrl.u32 %v1175_v0, 16 }
 0x288   : > { %v1194_v6 = vsel %vm1063_vm13, 0, %v1193_v2  ;;  %v1239_v7 = vpack.i.b16 %v1238_v4, %v1237_v60  ;;  %1266 = vst.msk [vmem:[#allocation2] sm:$0xf] %vm1265_vm14, %v1235_v3  ;;  %v1205_v8 = vperm.slane %v1201_v5, %v4717_v9  ;;  %v1219_v17 = vrot.slane %v1156_v36, 4 }
 0x289   : > { %v1243_v13 = vpack.i.b16 %v1194_v6, %v1175_v0  ;;  %v1246_v16 = vshrl.u32 %v1194_v6, 16  ;;  %v1199_v19 = vperm.slane %v1195_v54, %v4717_v9  ;;  %v1703_v21 = vpack.i.b16 %v1680_v18, %v4684_v59 }
 0x28a   : > { %1268 = vst.msk [vmem:[#allocation2 + $0x8] sm:$0xf] %vm1265_vm14, %v1239_v7  ;;  %v1206_v20 = vrot.slane %v1205_v8, 4  ;;  %v1705_v22 = vshrl.u32 %v1680_v18, 16  ;;  %v1218_v26 = vperm.slane %v1214_v10, %v4717_v9  ;;  %v1220_v27 = vsel %vm1063_vm13, %v1219_v17, %v1154_v55  ;;  %v1279_v8 = vpop.permute.xlu1 %1278 }
 0x28b   : > { %v1247_v24 = vpack.i.b16 %v1246_v16, %v1245_v14  ;;  %1270 = vst.msk [vmem:[#allocation2 + $0x10] sm:$0xf] %vm1265_vm14, %v1243_v13  ;;  %v1709_v29 = vpack.i.b16 %v4765_v31, %v1684_v12  ;;  %v1224_v35 = vperm.slane %v1220_v27, %v4717_v9  ;;  %v4807_v39 = vperm.slane %v1694_v51, %v4717_v9 }
 0x28c   : > { %v1207_v34 = vsel %vm1063_vm13, %v1206_v20, %v1199_v19  ;;  %v1706_v40 = vpack.i.b16 %v1705_v22, %v1704_v44  ;;  %v1770_v42 = vperm.slane %v1703_v21, %v4717_v9  ;;  %v1710_v43 = vshrl.u32 %v1684_v12, 16 }
 0x28d   : > { %1272 = vst.msk [vmem:[#allocation2 + $0x18] sm:$0xf] %vm1265_vm14, %v1247_v24  ;;  %v1211_v15 = vperm.slane %v1207_v34, %v4721_v30  ;;  %v1775_v31 = vperm.slane %v1709_v29, %v4717_v9  ;;  %v1225_v18 = vrot.slane %v1224_v35, 4  ;;  %v1299_v23 = vshrl.u32 %v4801_v28, 16 }
 0x28e   : > { %v1796_v32 = vperm.slane %v1706_v40, %v4717_v9  ;;  %v1697_v47 = vpack.i.b16 %v1686_v33, %v4732_v41  ;;  %v1778_v25 = vrot.slane %v1770_v42, 4  ;;  %v1712_v59 = vpack.i.b16 %v1711_v48, %v1710_v43  ;;  %v1281_v27 = vpop.permute.xlu0 %1280 }
 0x28f   : > { %v1212_v49 = vrot.slane %v1211_v15, 4  ;;  %v1699_v44 = vshrl.u32 %v1686_v33, 16  ;;  %v1226_v50 = vsel %vm1063_vm13, %v1225_v18, %v1218_v26  ;;  %v1253_v51 = vshrl.u32 %v1211_v15, 16 }
 0x290   : > { %v1804_v52 = vrot.slane %v1796_v32, 4  ;;  %v1776_v56 = vrot.slane %v1775_v31, 4  ;;  %v1230_v58 = vperm.slane %v1226_v50, %v4721_v30  ;;  %v1779_v60 = vsel %vm1063_vm13, %v1775_v31, %v1778_v25 }
 0x291   : > { %v1213_v57 = vsel %vm1063_vm13, 0, %v1212_v49  ;;  %v1801_v61 = vperm.slane %v1712_v59, %v4717_v9  ;;  %v1787_v2 = vperm.slane %v1779_v60, %v4721_v30  ;;  %v1722_v48 = vperm.slane %v1697_v47, %v4717_v9 }
 0x292   : > { %v1261_v38 = vshrl.u32 %v1213_v57, 16  ;;  %v1777_v0 = vsel %vm1063_vm13, %v1776_v56, %v1770_v42  ;;  %v1231_v3 = vrot.slane %v1230_v58, 4  ;;  %v1251_v4 = vpack.i.b16 %v1230_v58, %v1211_v15 }
 0x293   : > { %v1254_v55 = vshrl.u32 %v1230_v58, 16  ;;  %v1783_v36 = vperm.slane %v1777_v0, %v4721_v30  ;;  %v1790_v54 = vrot.slane %v1787_v2, 4  ;;  %v1802_v5 = vrot.slane %v1801_v61, 4  ;;  %v1285_v0 = vpop.permute.xlu1 %1284 }
 0x294   : > { %v1805_v6 = vsel %vm1063_vm13, %v1801_v61, %v1804_v52  ;;  %v1723_v7 = vrot.slane %v1722_v48, 4  ;;  %v1232_v10 = vsel %vm1063_vm13, 0, %v1231_v3  ;;  %1267 = vst.msk [vmem:[#allocation2 + $0x4] sm:$0xf] %vm1265_vm14, %v1251_v4  ;;  %v1700_v26 = vpack.i.b16 %v1699_v44, %v1698_v53  ;;  %v1289_v52 = vpop.permute.xlu2 %1288 }
 0x295   : > { %v1255_v12 = vpack.i.b16 %v1254_v55, %v1253_v51  ;;  %v1788_v13 = vrot.slane %v1783_v36, 4  ;;  %v1813_v14 = vperm.slane %v1805_v6, %v4721_v30  ;;  %v1259_v16 = vpack.i.b16 %v1232_v10, %v1213_v57 }
 0x296   : > { %v1262_v17 = vshrl.u32 %v1232_v10, 16  ;;  %v1791_v19 = vsel %vm1063_vm13, 0, %v1790_v54  ;;  %v1803_v20 = vsel %vm1063_vm13, %v1802_v5, %v1796_v32  ;;  %v4836_v24 = vsel %vm1063_vm13, %v1790_v54, %v1783_v36  ;;  %v1287_v10 = vpop.permute.xlu0 %1286 }
 0x297   : > { %1269 = vst.msk [vmem:[#allocation2 + $0xc] sm:$0xf] %vm1265_vm14, %v1255_v12  ;;  %v1809_v21 = vperm.slane %v1803_v20, %v4721_v30  ;;  %v1816_v22 = vrot.slane %v1813_v14, 4  ;;  %v1752_v33 = vrot.slane %v4807_v39, 4  ;;  %v1861_v34 = vrot.slane %v1791_v19, 4 }
 0x298   : > { %v1263_v29 = vpack.i.b16 %v1262_v17, %v1261_v38  ;;  %1271 = vst.msk [vmem:[#allocation2 + $0x14] sm:$0xf] %vm1265_vm14, %v1259_v16  ;;  %v1725_v35 = vsel %vm1063_vm13, %v1723_v7, %v4772_v46  ;;  %v1789_v40 = vsel %vm1063_vm13, 0, %v1788_v13  ;;  %v1727_v41 = vsel %vm1063_vm13, %v1722_v48, %v1726_v63 }
 0x299   : > { %v1814_v15 = vrot.slane %v1809_v21, 4  ;;  %v4846_v42 = vsel %vm1063_vm13, 0, %v1816_v22  ;;  %v1860_v53 = vperm.slane %v4836_v24, %v4717_v9  ;;  %v4855_v43 = vsel %vm1063_vm13, %v1816_v22, %v1809_v21 }
 0x29a   : > { %1273 = vst.msk [vmem:[#allocation2 + $0x1c] sm:$0xf] %vm1265_vm14, %v1263_v29  ;;  %v1731_v31 = vperm.slane %v1725_v35, %v4721_v30  ;;  %v1735_v18 = vperm.slane %v1727_v41, %v4721_v30  ;;  %v4860_v32 = vsel %vm1063_vm13, %v1861_v34, %v1789_v40  ;;  %v1880_v47 = vrot.slane %v4846_v42, 4 }
 0x29b   : > { %v1749_v46 = vperm.slane %v1700_v26, %v4717_v9  ;;  %v1292_v63 = vpack.i.b16 %v1279_v8, %v4695_v62  ;;  %v4866_v49 = vsel %vm1063_vm13, 0, %v1814_v15  ;;  %v1294_v44 = vshrl.u32 %v1279_v8, 16 }
 0x29c   : > { %v1736_v25 = vrot.slane %v1731_v31, 4  ;;  %v1738_v59 = vrot.slane %v1735_v18, 4  ;;  %v1304_v56 = vpack.i.b16 %v1281_v27, %v4703_v1  ;;  %v1306_v57 = vshrl.u32 %v1281_v27, 16 }
 0x29d   : > { %v1750_v50 = vrot.slane %v1749_v46, 4  ;;  %v1753_v51 = vsel %vm1063_vm13, %v1749_v46, %v1752_v33  ;;  %v1318_v38 = vperm.slane %v1292_v63, %v4717_v9  ;;  %v1295_v4 = vpack.i.b16 %v1294_v44, %v1293_v37 }
 0x29e   : > { %v1739_v58 = vsel %vm1063_vm13, 0, %v1738_v59  ;;  %v1761_v60 = vperm.slane %v1753_v51, %v4721_v30  ;;  %v4873_v61 = vsel %vm1063_vm13, %v1738_v59, %v1731_v31  ;;  %v1737_v2 = vsel %vm1063_vm13, 0, %v1736_v25  ;;  %v3668_v19 = vld [vmem:[#allocation2 + $0x8] sm:$0xff] }
 0x29f   : > { %v1751_v48 = vsel %vm1063_vm13, %v1750_v50, %v4807_v39  ;;  %v1823_v3 = vrot.slane %v1739_v58, 4  ;;  %v1312_v54 = vshrl.u32 %v1289_v52, 16  ;;  %v1307_v5 = vpack.i.b16 %v1306_v57, %v1305_v45  ;;  %v3667_v45 = vld [vmem:[#allocation2] sm:$0xff] }
 0x2a0   : > { %v4882_v55 = vperm.slane %v1751_v48, %v4721_v30  ;;  %v1764_v36 = vrot.slane %v1761_v60, 4  ;;  %v1822_v6 = vperm.slane %v4873_v61, %v4717_v9  ;;  %v4889_v7 = vperm.slane %v1295_v4, %v4717_v9 }
 0x2a1   : > { %v1370_v39 = vperm.slane %v1304_v56, %v4717_v9  ;;  %v1310_v8 = vpack.i.b16 %v1289_v52, %v1285_v0  ;;  %v4896_v37 = vsel %vm1063_vm13, %v1823_v3, %v1737_v2  ;;  %v1326_v12 = vrot.slane %v1318_v38, 4  ;;  %v3670_v27 = vld [vmem:[#allocation2 + $0x18] sm:$0xff] }
 0x2a2   : > { %v4893_v62 = vsel %vm1063_vm13, 0, %v1764_v36  ;;  %v1396_v1 = vperm.slane %v1307_v5, %v4717_v9  ;;  %v1762_v13 = vrot.slane %v4882_v55, 4  ;;  %v4902_v14 = vsel %vm1063_vm13, %v1764_v36, %v4882_v55 }
 0x2a3   : > { %v1378_v16 = vrot.slane %v1370_v39, 4  ;;  %v1311_v17 = vshrl.u32 %v1285_v0, 16  ;;  %v1842_v20 = vrot.slane %v4893_v62, 4  ;;  %v1352_v21 = vrot.slane %v4889_v7, 4 }
 0x2a4   : > { %v1375_v22 = vperm.slane %v1310_v8, %v4717_v9  ;;  %v1298_v26 = vpack.i.b16 %v1287_v10, %v4801_v28  ;;  %v1404_v29 = vrot.slane %v1396_v1, 4  ;;  %v1300_v34 = vshrl.u32 %v1287_v10, 16 }
 0x2a5   : > { %v1313_v33 = vpack.i.b16 %v1312_v54, %v1311_v17  ;;  %v1947_v41 = vsel %vm1942_vm15, %v3667_v45, 0  ;;  %v1975_v63 = vsel %vm1942_vm15, %v3668_v19, 0  ;;  %v2031_v50 = vsel %vm1942_vm15, %v3670_v27, 0 }
 0x2a6   : > { %v1376_v35 = vrot.slane %v1375_v22, 4  ;;  %v1379_v40 = vsel %vm1063_vm13, %v1375_v22, %v1378_v16  ;;  %v1323_v15 = vperm.slane %v1298_v26, %v4717_v9  ;;  %v1301_v46 = vpack.i.b16 %v1300_v34, %v1299_v23  ;;  %1956 = vmatpush.bf16.xpose.msra.mxu3 %v1947_v41  ;;  %2040 = vmatpush.bf16.xpose.msrb.mxu0 %v2031_v50 }
 0x2a7   : > { %v1387_v31 = vperm.slane %v1379_v40, %v4721_v30  ;;  %v1401_v18 = vperm.slane %v1313_v33, %v4717_v9  ;;  %v1828_v5 = vperm.slane %v4896_v37, %v4717_v9  ;;  %v1879_v24 = vperm.slane %v4855_v43, %v4717_v9 }
 0x2a8   : > { %v1377_v25 = vsel %vm1063_vm13, %v1376_v35, %v1370_v39  ;;  %v1324_v59 = vrot.slane %v1323_v15, 4  ;;  %v1327_v44 = vsel %vm1063_vm13, %v1323_v15, %v1326_v12  ;;  %v1349_v60 = vperm.slane %v1301_v46, %v4717_v9 }
 0x2a9   : > { %v1383_v51 = vperm.slane %v1377_v25, %v4721_v30  ;;  %v1390_v52 = vrot.slane %v1387_v31, 4  ;;  %v1402_v56 = vrot.slane %v1401_v18, 4  ;;  %v1405_v57 = vsel %vm1063_vm13, %v1401_v18, %v1404_v29 }
 0x2aa   : > { %v1413_v28 = vperm.slane %v1405_v57, %v4721_v30  ;;  %v1325_v23 = vsel %vm1063_vm13, %v1324_v59, %v1318_v38  ;;  %v1335_v58 = vperm.slane %v1327_v44, %v4721_v30  ;;  %v1350_v10 = vrot.slane %v1349_v60, 4 }
 0x2ab   : > { %v1388_v0 = vrot.slane %v1383_v51, 4  ;;  %v1391_v2 = vsel %vm1063_vm13, 0, %v1390_v52  ;;  %v1403_v48 = vsel %vm1063_vm13, %v1402_v56, %v1396_v1  ;;  %v1456_v3 = vsel %vm1063_vm13, %v1390_v52, %v1383_v51 }
 0x2ac   : > { %v1409_v4 = vperm.slane %v1403_v48, %v4721_v30  ;;  %v1416_v36 = vrot.slane %v1413_v28, 4  ;;  %v1461_v54 = vrot.slane %v1391_v2, 4  ;;  %v1331_v39 = vperm.slane %v1325_v23, %v4721_v30 }
 0x2ad   : > { %v1389_v38 = vsel %vm1063_vm13, 0, %v1388_v0  ;;  %v1338_v8 = vrot.slane %v1335_v58, 4  ;;  %v1460_v1 = vperm.slane %v1456_v3, %v4717_v9  ;;  %v1351_v29 = vsel %vm1063_vm13, %v1350_v10, %v4889_v7 }
 0x2ae   : > { %1984 = vmatpush.bf16.xpose.msrb.mxu3 %v1975_v63  ;;  %v1414_v12 = vrot.slane %v1409_v4, 4  ;;  %v1417_v45 = vsel %vm1063_vm13, 0, %v1416_v36  ;;  %v1462_v16 = vsel %vm1063_vm13, %v1461_v54, %v1389_v38  ;;  %v1475_v19 = vsel %vm1063_vm13, %v1416_v36, %v1409_v4 }
 0x2af   : > { %v1466_v17 = vperm.slane %v1462_v16, %v4717_v9  ;;  %v1480_v22 = vrot.slane %v1417_v45, 4  ;;  %v1336_v26 = vrot.slane %v1331_v39, 4  ;;  %v1339_v27 = vsel %vm1063_vm13, 0, %v1338_v8 }
 0x2b0   : > { %v1415_v37 = vsel %vm1063_vm13, 0, %v1414_v12  ;;  %v1353_v33 = vsel %vm1063_vm13, %v1349_v60, %v1352_v21  ;;  %v1357_v15 = vperm.slane %v1351_v29, %v4721_v30  ;;  %v1418_v18 = vsel %vm1063_vm13, %v1338_v8, %v1331_v39 }
 0x2b1   : > { %v1467_v34 = vrot.slane %v1466_v17, 4  ;;  %v1481_v35 = vsel %vm1063_vm13, %v1480_v22, %v1415_v37  ;;  %v1337_v40 = vsel %vm1063_vm13, 0, %v1336_v26  ;;  %v1361_v31 = vperm.slane %v1353_v33, %v4721_v30 }
 0x2b2   : > { %v1485_v41 = vperm.slane %v1481_v35, %v4717_v9  ;;  %v1423_v46 = vrot.slane %v1339_v27, 4  ;;  %v1479_v7 = vperm.slane %v1475_v19, %v4717_v9  ;;  %v1362_v25 = vrot.slane %v1357_v15, 4 }
 0x2b3   : > { %v1468_v63 = vsel %vm1063_vm13, %v1467_v34, %v1460_v1  ;;  %v1829_v21 = vrot.slane %v1828_v5, 4  ;;  %v1364_v50 = vrot.slane %v1361_v31, 4  ;;  %v1763_v52 = vsel %vm1063_vm13, 0, %v1762_v13 }
 0x2b4   : > { %v1472_v59 = vperm.slane %v1468_v63, %v4721_v30  ;;  %v1486_v44 = vrot.slane %v1485_v41, 4  ;;  %v1424_v51 = vsel %vm1063_vm13, %v1423_v46, %v1337_v40  ;;  %v1363_v56 = vsel %vm1063_vm13, 0, %v1362_v25 }
 0x2b5   : > { %v1422_v57 = vperm.slane %v1418_v18, %v4717_v9  ;;  %v1428_v28 = vperm.slane %v1424_v51, %v4717_v9  ;;  %v1365_v60 = vsel %vm1063_vm13, 0, %v1364_v50  ;;  %v1830_v0 = vsel %vm1063_vm13, %v1829_v21, %v1822_v6 }
 0x2b6   : > { %v1473_v23 = vrot.slane %v1472_v59, 4  ;;  %v1487_v58 = vsel %vm1063_vm13, %v1486_v44, %v1479_v7  ;;  %v1442_v13 = vrot.slane %v1365_v60, 4  ;;  %v1841_v48 = vperm.slane %v4902_v14, %v4717_v9 }
 0x2b7   : > { %v1491_v55 = vperm.slane %v1487_v58, %v4721_v30  ;;  %v1429_v2 = vrot.slane %v1428_v28, 4  ;;  %v1514_v4 = vshrl.u32 %v1472_v59, 16  ;;  %v1437_v36 = vsel %vm1063_vm13, %v1364_v50, %v1357_v15 }
 0x2b8   : > { %v1474_v3 = vsel %vm1063_vm13, 0, %v1473_v23  ;;  %v1843_v54 = vsel %vm1063_vm13, %v1842_v20, %v1763_v52  ;;  %v1443_v8 = vsel %vm1063_vm13, %v1442_v13, %v1363_v56  ;;  %v1866_v14 = vperm.slane %v4860_v32, %v4717_v9 }
 0x2b9   : > { %v1492_v5 = vrot.slane %v1491_v55, 4  ;;  %v1512_v61 = vpack.i.b16 %v1491_v55, %v1472_v59  ;;  %v1515_v38 = vshrl.u32 %v1491_v55, 16  ;;  %v1522_v6 = vshrl.u32 %v1474_v3, 16 }
 0x2ba   : > { %v1430_v39 = vsel %vm1063_vm13, %v1429_v2, %v1422_v57  ;;  %v1847_v10 = vperm.slane %v1843_v54, %v4717_v9  ;;  %v1447_v20 = vperm.slane %v1443_v8, %v4717_v9  ;;  %v1867_v19 = vrot.slane %v1866_v14, 4 }
 0x2bb   : > { %v1493_v12 = vsel %vm1063_vm13, 0, %v1492_v5  ;;  %v1516_v45 = vpack.i.b16 %v1515_v38, %v1514_v4  ;;  %1527 = vst.msk [vmem:[#allocation3 + $0x4] sm:$0xf] %vm1265_vm14, %v1512_v61  ;;  %v1434_v62 = vperm.slane %v1430_v39, %v4721_v30  ;;  %v1441_v26 = vperm.slane %v1437_v36, %v4717_v9  ;;  %v3669_v4 = vld [vmem:[#allocation2 + $0x10] sm:$0xff] }
 0x2bc   : > { %v1520_v1 = vpack.i.b16 %v1493_v12, %v1474_v3  ;;  %v1523_v16 = vshrl.u32 %v1493_v12, 16  ;;  %v1848_v17 = vrot.slane %v1847_v10, 4  ;;  %v1448_v37 = vrot.slane %v1447_v20, 4 }
 0x2bd   : > { %1529 = vst.msk [vmem:[#allocation3 + $0xc] sm:$0xf] %vm1265_vm14, %v1516_v45  ;;  %v1435_v22 = vrot.slane %v1434_v62, 4  ;;  %v4985_v32 = vperm.slane %v1830_v0, %v4721_v30  ;;  %v1868_v33 = vsel %vm1063_vm13, %v1867_v19, %v1860_v53  ;;  %v1881_v34 = vsel %vm1063_vm13, %v1880_v47, %v4866_v49 }
 0x2be   : > { %v1524_v27 = vpack.i.b16 %v1523_v16, %v1522_v6  ;;  %1531 = vst.msk [vmem:[#allocation3 + $0x14] sm:$0xf] %vm1265_vm14, %v1520_v1  ;;  %v1849_v29 = vsel %vm1063_vm13, %v1848_v17, %v1841_v48  ;;  %v1449_v35 = vsel %vm1063_vm13, %v1448_v37, %v1441_v26  ;;  %v1872_v15 = vperm.slane %v1868_v33, %v4721_v30 }
 0x2bf   : > { %v1853_v40 = vperm.slane %v1849_v29, %v4721_v30  ;;  %v1453_v41 = vperm.slane %v1449_v35, %v4721_v30  ;;  %v1498_v31 = vshrl.u32 %v1434_v62, 16  ;;  %v1885_v53 = vperm.slane %v1881_v34, %v4717_v9 }
 0x2c0   : > { %1533 = vst.msk [vmem:[#allocation3 + $0x1c] sm:$0xf] %vm1265_vm14, %v1524_v27  ;;  %v1436_v42 = vsel %vm1063_vm13, 0, %v1435_v22  ;;  %v1835_v49 = vrot.slane %v4985_v32, 4  ;;  %v1873_v44 = vrot.slane %v1872_v15, 4  ;;  %v2003_v8 = vsel %vm1942_vm15, %v3669_v4, 0 }
 0x2c1   : > { %v1896_v47 = vpack.i.b16 %v1853_v40, %v4985_v32  ;;  %v1854_v18 = vrot.slane %v1853_v40, 4  ;;  %v1454_v46 = vrot.slane %v1453_v41, 4  ;;  %v1496_v63 = vpack.i.b16 %v1453_v41, %v1434_v62 }
 0x2c2   : > { %v1499_v7 = vshrl.u32 %v1453_v41, 16  ;;  %v1886_v25 = vrot.slane %v1885_v53, 4  ;;  %v1836_v21 = vsel %vm1063_vm13, 0, %v1835_v49  ;;  %v1506_v56 = vshrl.u32 %v1436_v42, 16 }
 0x2c3   : > { %v1855_v59 = vsel %vm1063_vm13, 0, %v1854_v18  ;;  %v1455_v43 = vsel %vm1063_vm13, 0, %v1454_v46  ;;  %1526 = vst.msk [vmem:[#allocation3] sm:$0xf] %vm1265_vm14, %v1496_v63  ;;  %v1934_v23 = vunpack.c.l.b16 %v1896_v47  ;;  %v1903_v58 = vshrl.u32 %v1836_v21, 16 }
 0x2c4   : > { %v1500_v50 = vpack.i.b16 %v1499_v7, %v1498_v31  ;;  %v1887_v51 = vsel %vm1063_vm13, %v1886_v25, %v1879_v24  ;;  %v1504_v52 = vpack.i.b16 %v1455_v43, %v1436_v42  ;;  %v1507_v57 = vshrl.u32 %v1455_v43, 16 }
 0x2c5   : > { %v1891_v28 = vperm.slane %v1887_v51, %v4721_v30  ;;  %v1904_v60 = vshrl.u32 %v1855_v59, 16  ;;  %v1874_v2 = vsel %vm1063_vm13, 0, %v1873_v44  ;;  %v1898_v12 = vshrl.u32 %v1853_v40, 16 }
 0x2c6   : > { %1528 = vst.msk [vmem:[#allocation3 + $0x8] sm:$0xf] %vm1265_vm14, %v1500_v50  ;;  %v1508_v0 = vpack.i.b16 %v1507_v57, %v1506_v56  ;;  %v1915_v54 = vshrl.u32 %v1874_v2, 16  ;;  %v1897_v20 = vshrl.u32 %v4985_v32, 16  ;;  %v1909_v17 = vshrl.u32 %v1872_v15, 16 }
 0x2c7   : > { %1530 = vst.msk [vmem:[#allocation3 + $0x10] sm:$0xf] %vm1265_vm14, %v1504_v52  ;;  %v1908_v55 = vpack.i.b16 %v1891_v28, %v1872_v15  ;;  %v1892_v13 = vrot.slane %v1891_v28, 4  ;;  %v1905_v48 = vpack.i.b16 %v1904_v60, %v1903_v58  ;;  %v1910_v1 = vshrl.u32 %v1891_v28, 16 }
 0x2c8   : > { %1532 = vst.msk [vmem:[#allocation3 + $0x18] sm:$0xf] %vm1265_vm14, %v1508_v0  ;;  %v1899_v16 = vpack.i.b16 %v1898_v12, %v1897_v20  ;;  %v1902_v29 = vpack.i.b16 %v1855_v59, %v1836_v21 }
 0x2c9   : > { %v1935_v3 = vunpack.c.l.b16 %v1908_v55  ;;  %v1893_v36 = vsel %vm1063_vm13, 0, %v1892_v13  ;;  %v2019_v39 = vunpack.c.l.b16 %v1905_v48  ;;  %v1911_v19 = vpack.i.b16 %v1910_v1, %v1909_v17 }
 0x2ca   : > { %v1916_v5 = vshrl.u32 %v1893_v36, 16  ;;  %v3671_v38 = vld [vmem:[#allocation3] sm:$0xff]  ;;  %v1963_v22 = vunpack.c.l.b16 %v1899_v16  ;;  %v1914_v33 = vpack.i.b16 %v1893_v36, %v1874_v2  ;;  %v1991_v34 = vunpack.c.l.b16 %v1902_v29 }
 0x2cb   : > { %v1936_v61 = vpack.c.b16 %v1935_v3, %v1934_v23  ;;  %2149 = vmatpush.bf16.msrb.mxu2 %v3671_v38  ;;  %v1964_v26 = vunpack.c.l.b16 %v1911_v19 }
 0x2cc   : > { %v1917_v6 = vpack.i.b16 %v1916_v5, %v1915_v54  ;;  %v1992_v35 = vunpack.c.l.b16 %v1914_v33 }
 0x2cd   : > { %3436 = vmatmul.msk.bf16.vlgmr.msra.gmra.mxu3 %vm1942_vm15, %v1936_v61  ;;  %v3672_v10 = vld [vmem:[#allocation3 + $0x8] sm:$0xff]  ;;  %v1965_v27 = vpack.c.b16 %v1964_v26, %v1963_v22 }
 0x2ce   : > { %2012 = vmatpush.bf16.xpose.msra.mxu3 %v2003_v8  ;;  %v2020_v14 = vunpack.c.l.b16 %v1917_v6  ;;  %v3673_v37 = vld [vmem:[#allocation3 + $0x10] sm:$0xff]  ;;  %v1993_v40 = vpack.c.b16 %v1992_v35, %v1991_v34 }
 0x2cf   : > { %2177 = vmatpush.bf16.msra.mxu2 %v3672_v10  ;;  %v3674_v62 = vld [vmem:[#allocation3 + $0x18] sm:$0xff] }
 0x2d0   : > { %v2021_v45 = vpack.c.b16 %v2020_v14, %v2019_v39  ;;  %2233 = vmatpush.bf16.msra.mxu0 %v3674_v62 }
 0x2d2   : > { %3451 = vmatmul.msk.bf16.vlgmr.msrb.gmra.mxu0 %vm1942_vm15, %v2021_v45 }
 0x2dd   : > { %3441 = vmatmul.msk.bf16.vlgmr.msrb.gmra.mxu3 %vm1942_vm15, %v1965_v27 }
 0x2de   : > { %2205 = vmatpush.bf16.msrb.mxu3 %v3673_v37 }
 0x2ed   : > { %3446 = vmatmul.msk.bf16.vlgmr.msra.gmra.mxu3 %vm1942_vm15, %v1993_v40 }
 0x34f   : > { %v5027_v24 = vpop.f32.mrf.mxu0 }
 0x350   : > { %v1958_v32 = vpop.f32.mrf.mxu3  ;;  %v2066_v59 = vsel %vm2047_vm0, %v5027_v24, -inf }
 0x351   : > { %v2048_v15 = vsel %vm2047_vm0, %v1958_v32, -inf }
 0x352   : > { %2049 = vmax.xlane.f32.xlu1 %v2048_v15 }
 0x357   : > { %v2044_v47 = vpop.f32.mrf.mxu0 }
 0x358   : > { %v1960_v41 = vpop.f32.mrf.mxu3  ;;  %v2069_v18 = vsel %vm2047_vm0, %v2044_v47, -inf }
 0x359   : > { %v2051_v31 = vsel %vm2047_vm0, %v1960_v41, -inf }
 0x35a   : > { %2052 = vmax.xlane.f32.xlu0 %v2051_v31 }
 0x360   : > { %v1986_v53 = vpop.f32.mrf.mxu3 }
 0x361   : > { %v2054_v42 = vsel %vm2047_vm0, %v1986_v53, -inf }
 0x362   : > { %2055 = vmax.xlane.f32.xlu0 %v2054_v42 }
 0x368   : > { %v1988_v49 = vpop.f32.mrf.mxu3 }
 0x369   : > { %v2057_v25 = vsel %vm2047_vm0, %v1988_v49, -inf }
 0x36a   : > { %2070 = vmax.xlane.f32.xlu0 %v2069_v18 }
 0x370   : > { %v2014_v46 = vpop.f32.mrf.mxu3 }
 0x371   : > { %v2060_v63 = vsel %vm2047_vm0, %v2014_v46, -inf }
 0x372   : > { %2061 = vmax.xlane.f32.xlu2 %v2060_v63 }
 0x378   : > { %v2016_v7 = vpop.f32.mrf.mxu3 }
 0x379   : > { %v2063_v21 = vsel %vm2047_vm0, %v2016_v7, -inf }
 0x37a   : > { %2058 = vmax.xlane.f32.xlu2 %v2057_v25  ;;  %2064 = vmax.xlane.f32.xlu1 %v2063_v21 }
 0x382   : > { %2067 = vmax.xlane.f32.xlu1 %v2066_v59 }
 0x3c5   : > { %v2050_v44 = vpop.xlane.xlu1 %2049 }
 0x3c6   : > { %v2072_v43 = vsub.f32 %v1958_v32, %v2050_v44 }
 0x3c8   : > { %v2080_v50 = vmul.f32 1.442695, %v2072_v43 }
 0x3ca   : > { %3904 = vpow2.f32 %v2080_v50 }
 0x3cd   : > { %v2053_v51 = vpop.xlane.xlu0 %2052 }
 0x3ce   : > { %v2073_v52 = vsub.f32 %v1960_v41, %v2053_v51 }
 0x3d0   : > { %v3905_v56 = vpop.eup %3904  ;;  %v2082_v57 = vmul.f32 1.442695, %v2073_v52 }
 0x3d1   : > { %v2096_v28 = vsel %vm2047_vm0, %v3905_v56, 0.0  ;;  %v2120_v58 = vpack.c.bf16 %v3905_v56, %v3905_v56 }
 0x3d2   : > { %3906 = vpow2.f32 %v2082_v57  ;;  %2097 = vadd.xlane.f32.xlu0 %v2096_v28 }
 0x3d3   : > { %v2130_v2 = vunpack.c.l.b16 %v2120_v58 }
 0x3d5   : > { %v2056_v23 = vpop.xlane.xlu0 %2055 }
 0x3d6   : > { %v2074_v5 = vsub.f32 %v1986_v53, %v2056_v23 }
 0x3d8   : > { %v3907_v60 = vpop.eup %3906  ;;  %v2084_v8 = vmul.f32 1.442695, %v2074_v5 }
 0x3d9   : > { %v2121_v0 = vpack.c.bf16 %v3907_v60, %v3907_v60  ;;  %v2099_v55 = vsel %vm2047_vm0, %v3907_v60, 0.0 }
 0x3da   : > { %2100 = vadd.xlane.f32.xlu2 %v2099_v55 }
 0x3db   : > { %v2131_v13 = vunpack.c.l.b16 %v2121_v0 }
 0x3dd   : > { %v2071_v48 = vpop.xlane.xlu0 %2070  ;;  %v2132_v3 = vpack.c.b16 %v2131_v13, %v2130_v2 }
 0x3de   : > { %v2079_v4 = vsub.f32 %v2044_v47, %v2071_v48 }
 0x3df   : > { %3456 = vmatmul.msk.bf16.vlgmr.msrb.gmra.mxu2 %vm2047_vm0, %v2132_v3 }
 0x3e0   : > { %v2094_v36 = vmul.f32 1.442695, %v2079_v4 }
 0x3e2   : > { %3908 = vpow2.f32 %v2094_v36 }
 0x3e5   : > { %v2062_v54 = vpop.xlane.xlu2 %2061 }
 0x3e6   : > { %v2076_v61 = vsub.f32 %v2014_v46, %v2062_v54 }
 0x3e8   : > { %v3909_v38 = vpop.eup %3908  ;;  %v2088_v6 = vmul.f32 1.442695, %v2076_v61 }
 0x3e9   : > { %v2117_v39 = vsel %vm2047_vm0, %v3909_v38, 0.0  ;;  %v2127_v47 = vpack.c.bf16 %v3909_v38, %v3909_v38 }
 0x3ea   : > { %3910 = vpow2.f32 %v2088_v6  ;;  %2118 = vadd.xlane.f32.xlu0 %v2117_v39 }
 0x3eb   : > { %3912 = vpow2.f32 %v2084_v8  ;;  %v2215_v46 = vunpack.c.l.b16 %v2127_v47 }
 0x3ed   : > { %v2059_v10 = vpop.xlane.xlu2 %2058  ;;  %v2065_v14 = vpop.xlane.xlu1 %2064 }
 0x3ee   : > { %v2075_v12 = vsub.f32 %v1988_v49, %v2059_v10  ;;  %v2077_v45 = vsub.f32 %v2016_v7, %v2065_v14 }
 0x3f0   : > { %v3911_v62 = vpop.eup %3910  ;;  %v2086_v20 = vmul.f32 1.442695, %v2075_v12  ;;  %v2090_v1 = vmul.f32 1.442695, %v2077_v45 }
 0x3f1   : > { %v2108_v16 = vsel %vm2047_vm0, %v3911_v62, 0.0  ;;  %v3913_v17 = vpop.eup %3912  ;;  %v2124_v27 = vpack.c.bf16 %v3911_v62, %v3911_v62 }
 0x3f2   : > { %3914 = vpow2.f32 %v2086_v20  ;;  %2109 = vadd.xlane.f32.xlu2 %v2108_v16  ;;  %v2122_v26 = vpack.c.bf16 %v3913_v17, %v3913_v17  ;;  %v2102_v35 = vsel %vm2047_vm0, %v3913_v17, 0.0 }
 0x3f3   : > { %3916 = vpow2.f32 %v2090_v1  ;;  %v2186_v41 = vunpack.c.l.b16 %v2124_v27 }
 0x3f4   : > { %v2158_v32 = vunpack.c.l.b16 %v2122_v26 }
 0x3f5   : > { %v2068_v19 = vpop.xlane.xlu1 %2067 }
 0x3f6   : > { %v2078_v22 = vsub.f32 %v5027_v24, %v2068_v19 }
 0x3f8   : > { %v3915_v37 = vpop.eup %3914  ;;  %v2092_v29 = vmul.f32 1.442695, %v2078_v22 }
 0x3f9   : > { %v3917_v33 = vpop.eup %3916  ;;  %v2123_v34 = vpack.c.bf16 %v3915_v37, %v3915_v37  ;;  %v2105_v21 = vsel %vm2047_vm0, %v3915_v37, 0.0 }
 0x3fa   : > { %v2125_v40 = vpack.c.bf16 %v3917_v33, %v3917_v33  ;;  %3918 = vpow2.f32 %v2092_v29  ;;  %2103 = vadd.xlane.f32.xlu2 %v2102_v35  ;;  %v2111_v25 = vsel %vm2047_vm0, %v3917_v33, 0.0 }
 0x3fb   : > { %v2159_v15 = vunpack.c.l.b16 %v2123_v34 }
 0x3fc   : > { %v2187_v31 = vunpack.c.l.b16 %v2125_v40 }
 0x3fd   : > { %v2160_v53 = vpack.c.b16 %v2159_v15, %v2158_v32 }
 0x3fe   : > { %v2188_v42 = vpack.c.b16 %v2187_v31, %v2186_v41 }
 0x3ff   : > { %3461 = vmatmul.msk.bf16.vlgmr.msra.gmra.mxu2 %vm2047_vm0, %v2160_v53 }
 0x400   : > { %v3919_v24 = vpop.eup %3918  ;;  %3466 = vmatmul.msk.bf16.vlgmr.msrb.gmra.mxu3 %vm2047_vm0, %v2188_v42 }
 0x401   : > { %v2126_v49 = vpack.c.bf16 %v3919_v24, %v3919_v24  ;;  %v2114_v18 = vsel %vm2047_vm0, %v3919_v24, 0.0 }
 0x402   : > { %2115 = vadd.xlane.f32.xlu1 %v2114_v18 }
 0x403   : > { %v2214_v63 = vunpack.c.l.b16 %v2126_v49 }
 0x405   : > { %v2216_v7 = vpack.c.b16 %v2215_v46, %v2214_v63 }
 0x407   : > { %3471 = vmatmul.msk.bf16.vlgmr.msra.gmra.mxu0 %vm2047_vm0, %v2216_v7 }
 0x40a   : > { %2112 = vadd.xlane.f32.xlu1 %v2111_v25 }
 0x412   : > { %2106 = vadd.xlane.f32.xlu1 %v2105_v21 }
 0x445   : > { %v2098_v51 = vpop.xlane.xlu0 %2097 }
 0x446   : > { %3920 = vrcp.f32 %v2098_v51 }
 0x44c   : > { %v3921_v28 = vpop.eup %3920 }
 0x44d   : > { %v2101_v59 = vpop.xlane.xlu2 %2100 }
 0x45d   : > { %v2119_v58 = vpop.xlane.xlu0 %2118 }
 0x462   : > { %v2151_v43 = vpop.f32.mrf.mxu2 }
 0x463   : > { %v2248_v23 = vmul.f32 %v3921_v28, %v2151_v43 }
 0x465   : > { %v2110_v44 = vpop.xlane.xlu2 %2109  ;;  %v2259_v3 = vrot.slane %v2248_v23, 4 }
 0x46a   : > { %v2153_v56 = vpop.f32.mrf.mxu2 }
 0x46d   : > { %v2104_v52 = vpop.xlane.xlu2 %2103 }
 0x46e   : > { %3922 = vrcp.f32 %v2104_v52 }
 0x46f   : > { %3924 = vrcp.f32 %v2110_v44 }
 0x474   : > { %v3923_v60 = vpop.eup %3922 }
 0x475   : > { %v2116_v50 = vpop.xlane.xlu1 %2115  ;;  %v3925_v55 = vpop.eup %3924 }
 0x476   : > { %3926 = vrcp.f32 %v2116_v50 }
 0x477   : > { %3928 = vrcp.f32 %v2101_v59 }
 0x478   : > { %3930 = vrcp.f32 %v2119_v58 }
 0x47c   : > { %v3927_v48 = vpop.eup %3926 }
 0x47d   : > { %v2113_v57 = vpop.xlane.xlu1 %2112  ;;  %v3929_v38 = vpop.eup %3928 }
 0x47e   : > { %3932 = vrcp.f32 %v2113_v57  ;;  %v2249_v8 = vmul.f32 %v3929_v38, %v2153_v56  ;;  %v3931_v17 = vpop.eup %3930 }
 0x480   : > { %v2315_v37 = vrot.slane %v2249_v8, 4 }
 0x482   : > { %v2179_v0 = vpop.f32.mrf.mxu2 }
 0x483   : > { %v2250_v2 = vmul.f32 %v3923_v60, %v2179_v0  ;;  %v2207_v13 = vpop.f32.mrf.mxu3 }
 0x484   : > { %v2252_v4 = vmul.f32 %v3925_v55, %v2207_v13  ;;  %v2235_v36 = vpop.f32.mrf.mxu0  ;;  %v3933_v26 = vpop.eup %3932 }
 0x485   : > { %v2271_v54 = vrot.slane %v2250_v2, 4  ;;  %v2254_v5 = vmul.f32 %v3927_v48, %v2235_v36  ;;  %v2107_v61 = vpop.xlane.xlu1 %2106 }
 0x486   : > { %v2256_v6 = vrot.slane %v2252_v4, 4  ;;  %v2260_v39 = vsel %vm1063_vm13, %v2252_v4, %v2259_v3  ;;  %3934 = vrcp.f32 %v2107_v61 }
 0x487   : > { %v2268_v10 = vperm.slane %v2260_v39, %v4717_v9  ;;  %v2269_v14 = vrot.slane %v2254_v5, 4  ;;  %v2272_v12 = vsel %vm1063_vm13, %v2254_v5, %v2271_v54 }
 0x488   : > { %v2258_v45 = vsel %vm1063_vm13, %v2256_v6, %v2248_v23  ;;  %v2280_v62 = vperm.slane %v2272_v12, %v4717_v9 }
 0x489   : > { %v2264_v20 = vperm.slane %v2258_v45, %v4717_v9  ;;  %v2295_v1 = vrot.slane %v2268_v10, 4  ;;  %v2270_v16 = vsel %vm1063_vm13, %v2269_v14, %v2250_v2 }
 0x48a   : > { %v2276_v19 = vperm.slane %v2270_v16, %v4717_v9  ;;  %v2293_v22 = vrot.slane %v2280_v62, 4  ;;  %v2181_v15 = vpop.f32.mrf.mxu2 }
 0x48b   : > { %v2283_v27 = vrot.slane %v2264_v20, 4  ;;  %v2296_v29 = vsel %vm1063_vm13, %v2280_v62, %v2295_v1  ;;  %v2209_v33 = vpop.f32.mrf.mxu3 }
 0x48c   : > { %v3935_v34 = vpop.eup %3934  ;;  %v2281_v35 = vrot.slane %v2276_v19, 4  ;;  %v2294_v40 = vsel %vm1063_vm13, %v2293_v22, %v2268_v10  ;;  %v2304_v32 = vperm.slane %v2296_v29, %v4721_v30  ;;  %v2253_v41 = vmul.f32 %v3933_v26, %v2209_v33  ;;  %v2237_v31 = vpop.f32.mrf.mxu0 }
 0x48d   : > { %v2284_v53 = vsel %vm1063_vm13, %v2276_v19, %v2283_v27  ;;  %v2300_v42 = vperm.slane %v2294_v40, %v4721_v30  ;;  %v2251_v47 = vmul.f32 %v3935_v34, %v2181_v15  ;;  %v2255_v24 = vmul.f32 %v3931_v17, %v2237_v31 }
 0x48e   : > { %v2282_v49 = vsel %vm1063_vm13, %v2281_v35, %v2264_v20  ;;  %v2292_v18 = vperm.slane %v2284_v53, %v4721_v30  ;;  %v2311_v46 = vrot.slane %v2304_v32, 4  ;;  %v2313_v63 = vrot.slane %v2253_v41, 4 }
 0x48f   : > { %v2288_v7 = vperm.slane %v2282_v49, %v4721_v30  ;;  %v2309_v25 = vrot.slane %v2300_v42, 4  ;;  %v2327_v21 = vrot.slane %v2251_v47, 4  ;;  %v2316_v59 = vsel %vm1063_vm13, %v2253_v41, %v2315_v37 }
 0x490   : > { %v2307_v44 = vrot.slane %v2292_v18, 4  ;;  %v2312_v43 = vsel %vm1063_vm13, 0.0, %v2311_v46  ;;  %v2380_v50 = vsel %vm1063_vm13, %v2311_v46, %v2300_v42  ;;  %v2314_v51 = vsel %vm1063_vm13, %v2313_v63, %v2249_v8 }
 0x491   : > { %v2305_v52 = vrot.slane %v2288_v7, 4  ;;  %v2310_v56 = vsel %vm1063_vm13, 0.0, %v2309_v25  ;;  %v2385_v57 = vrot.slane %v2312_v43, 4  ;;  %v2320_v28 = vperm.slane %v2314_v51, %v4717_v9 }
 0x492   : > { %v2308_v23 = vsel %vm1063_vm13, 0.0, %v2307_v44  ;;  %v2369_v58 = vsel %vm1063_vm13, %v2307_v44, %v2288_v7  ;;  %v2324_v60 = vperm.slane %v2316_v59, %v4717_v9  ;;  %v2325_v0 = vrot.slane %v2255_v24, 4 }
 0x493   : > { %v2306_v55 = vsel %vm1063_vm13, 0.0, %v2305_v52  ;;  %v2374_v2 = vrot.slane %v2308_v23, 4  ;;  %v2339_v13 = vrot.slane %v2320_v28, 4  ;;  %v2328_v48 = vsel %vm1063_vm13, %v2255_v24, %v2327_v21 }
 0x494   : > { %v2351_v3 = vrot.slane %v2324_v60, 4  ;;  %v2326_v4 = vsel %vm1063_vm13, %v2325_v0, %v2251_v47  ;;  %v2336_v36 = vperm.slane %v2328_v48, %v4717_v9  ;;  %v2373_v54 = vperm.slane %v2369_v58, %v4717_v9 }
 0x495   : > { %v2332_v5 = vperm.slane %v2326_v4, %v4717_v9  ;;  %v2375_v61 = vsel %vm1063_vm13, %v2374_v2, %v2306_v55  ;;  %v2384_v38 = vperm.slane %v2380_v50, %v4717_v9  ;;  %v2386_v6 = vsel %vm1063_vm13, %v2385_v57, %v2310_v56 }
 0x496   : > { %v2349_v39 = vrot.slane %v2336_v36, 4  ;;  %v2352_v8 = vsel %vm1063_vm13, %v2336_v36, %v2351_v3  ;;  %v2379_v10 = vperm.slane %v2375_v61, %v4717_v9  ;;  %v2390_v14 = vperm.slane %v2386_v6, %v4717_v9 }
 0x497   : > { %v2337_v12 = vrot.slane %v2332_v5, 4  ;;  %v2340_v45 = vsel %vm1063_vm13, %v2332_v5, %v2339_v13  ;;  %v2360_v62 = vperm.slane %v2352_v8, %v4721_v30  ;;  %v2393_v20 = vrot.slane %v2373_v54, 4 }
 0x498   : > { %v2348_v1 = vperm.slane %v2340_v45, %v4721_v30  ;;  %v2350_v16 = vsel %vm1063_vm13, %v2349_v39, %v2324_v60  ;;  %v2405_v17 = vrot.slane %v2384_v38, 4  ;;  %v2391_v33 = vrot.slane %v2379_v10, 4 }
 0x499   : > { %v2338_v19 = vsel %vm1063_vm13, %v2337_v12, %v2320_v28  ;;  %v2356_v22 = vperm.slane %v2350_v16, %v4721_v30  ;;  %v2367_v26 = vrot.slane %v2360_v62, 4  ;;  %v2394_v29 = vsel %vm1063_vm13, %v2379_v10, %v2393_v20 }
 0x49a   : > { %v2344_v37 = vperm.slane %v2338_v19, %v4721_v30  ;;  %v2363_v27 = vrot.slane %v2348_v1, 4  ;;  %v2406_v32 = vsel %vm1063_vm13, %v2390_v14, %v2405_v17  ;;  %v2402_v24 = vperm.slane %v2394_v29, %v4721_v30  ;;  %v3682_v17 = vld [vmem:[#allocation15 + $0x38] sm:$0xff]  ;;  %v3681_v19 = vld [vmem:[#allocation15 + $0x30] sm:$0xff]  ;;  %v3676_v29 = vld [vmem:[#allocation15 + $0x8] sm:$0xff] }
 0x49b   : > { %v2365_v34 = vrot.slane %v2356_v22, 4  ;;  %v2368_v35 = vsel %vm1063_vm13, 0.0, %v2367_v26  ;;  %v2434_v40 = vsel %vm1063_vm13, %v2367_v26, %v2356_v22  ;;  %v2414_v46 = vperm.slane %v2406_v32, %v4721_v30  ;;  %2577 = vmatpush.bf16.msrb.mxu1 %v3682_v17  ;;  %v3680_v22 = vld [vmem:[#allocation15 + $0x28] sm:$0xff]  ;;  %v3679_v26 = vld [vmem:[#allocation15 + $0x20] sm:$0xff] }
 0x49c   : > { %v2361_v15 = vrot.slane %v2344_v37, 4  ;;  %v2364_v41 = vsel %vm1063_vm13, 0.0, %v2363_v27  ;;  %v2423_v31 = vsel %vm1063_vm13, %v2363_v27, %v2344_v37  ;;  %v2439_v53 = vrot.slane %v2368_v35, 4  ;;  %v3678_v37 = vld [vmem:[#allocation15 + $0x18] sm:$0xff]  ;;  %v3677_v27 = vld [vmem:[#allocation15 + $0x10] sm:$0xff] }
 0x49d   : > { %v2366_v42 = vsel %vm1063_vm13, 0.0, %v2365_v34  ;;  %v2428_v47 = vrot.slane %v2364_v41, 4  ;;  %v2427_v49 = vperm.slane %v2423_v31, %v4717_v9  ;;  %v2438_v63 = vperm.slane %v2434_v40, %v4717_v9  ;;  %v3540_v17 = vld [vmem:[#allocation16 + $0x48] sm:$0xf0] }
 0x49e   : > { %v2362_v18 = vsel %vm1063_vm13, 0.0, %v2361_v15  ;;  %v2440_v7 = vsel %vm1063_vm13, %v2439_v53, %v2366_v42  ;;  %v2392_v50 = vsel %vm1063_vm13, %v2391_v33, %v2373_v54  ;;  %v2421_v51 = vrot.slane %v2402_v24, 4  ;;  %v3675_v33 = vld [vmem:[#allocation15] sm:$0xff] }
 0x49f   : > { %v2429_v25 = vsel %vm1063_vm13, %v2428_v47, %v2362_v18  ;;  %v2444_v21 = vperm.slane %v2440_v7, %v4717_v9  ;;  %v2447_v59 = vrot.slane %v2427_v49, 4  ;;  %v2459_v43 = vrot.slane %v2438_v63, 4  ;;  %2578 = vmatpush.bf16.msrb.mxu1 %v3681_v19 }
 0x4a0   : > { %v2433_v44 = vperm.slane %v2429_v25, %v4717_v9  ;;  %v2398_v52 = vperm.slane %v2392_v50, %v4721_v30  ;;  %v2403_v56 = vrot.slane %v2390_v14, 4  ;;  %v2419_v58 = vrot.slane %v2414_v46, 4  ;;  %v3890_v25 = vld [vmem:[%s5344_s11] ss:$0 sm:$0xff] }
 0x4a1   : > { %v2457_v57 = vrot.slane %v2444_v21, 4  ;;  %v2460_v23 = vsel %vm1063_vm13, %v2444_v21, %v2459_v43  ;;  %v2422_v61 = vsel %vm1063_vm13, %v2414_v46, %v2421_v51 }
 0x4a2   : > { %v2448_v28 = vsel %vm1063_vm13, %v2433_v44, %v2447_v59  ;;  %v2445_v60 = vrot.slane %v2433_v44, 4  ;;  %v2468_v55 = vperm.slane %v2460_v23, %v4721_v30  ;;  %v2404_v9 = vsel %vm1063_vm13, %v2403_v56, %v2384_v38  ;;  %v3948_v44 = vld [vmem:[%s4602_s16] sm:$0xff] }
 0x4a3   : > { %v2456_v0 = vperm.slane %v2448_v28, %v4721_v30  ;;  %v2410_v2 = vperm.slane %v2404_v9, %v4721_v30  ;;  %v2417_v13 = vrot.slane %v2398_v52, 4  ;;  %v2458_v3 = vsel %vm1063_vm13, %v2457_v57, %v2438_v63  ;;  %2579 = vmatpush.bf16.msrb.mxu1 %v3680_v22  ;;  %v3530_v22 = vld [vmem:[#allocation16 + $0x30] sm:$0xf] }
 0x4a4   : > { %v2446_v48 = vsel %vm1063_vm13, %v2445_v60, %v2427_v49  ;;  %v2473_v36 = vrot.slane %v2468_v55, 4  ;;  %v2464_v5 = vperm.slane %v2458_v3, %v4721_v30  ;;  %v2420_v6 = vsel %vm1063_vm13, %v2419_v58, %v2402_v24 }
 0x4a5   : > { %v2475_v4 = vrot.slane %v2456_v0, 4  ;;  %v2452_v54 = vperm.slane %v2446_v48, %v4721_v30  ;;  %v2415_v39 = vrot.slane %v2410_v2, 4  ;;  %v2418_v20 = vsel %vm1063_vm13, %v2410_v2, %v2417_v13  ;;  %v3562_v2 = vld [vmem:[#allocation16 + $0x70] sm:$0xf]  ;;  %v3698_v13 = vld [vmem:[#allocation16 + $0x74] sm:$0xf0] }
 0x4a6   : > { %v2474_v8 = vsel %vm1063_vm13, %v2473_v36, %v2456_v0  ;;  %v2469_v10 = vrot.slane %v2464_v5, 4  ;;  %v3697_v48 = vld [vmem:[#allocation16 + $0x74] sm:$0xf]  ;;  %v3563_v3 = vor.u32 %v3698_v13, %v3562_v2 }
 0x4a7   : > { %v2476_v38 = vsel %vm1063_vm13, %v2468_v55, %v2475_v4  ;;  %v2471_v14 = vrot.slane %v2452_v54, 4  ;;  %v3875_v45 = vpack.i.bf16 %v2474_v8, %v2420_v6  ;;  %v2416_v62 = vsel %vm1063_vm13, %v2415_v39, %v2398_v52  ;;  %2580 = vmatpush.bf16.msrb.mxu1 %v3679_v26  ;;  %v3949_v52 = vld [vmem:[%s4602_s16 + $0x8] sm:$0xff]  ;;  %v3546_v8 = vld [vmem:[#allocation16 + $0x50] sm:$0xf] }
 0x4a8   : > { %v3880_v12 = vpack.i.bf16 %v2476_v38, %v2422_v61  ;;  %v2470_v30 = vsel %vm1063_vm13, %v2469_v10, %v2452_v54  ;;  %v3564_v4 = vld [vmem:[#allocation16 + $0x78] sm:$0xf0]  ;;  %2745 = vmatpush.bf16.msrb.mxu2 %v3563_v3  ;;  %v3554_v54 = vld [vmem:[#allocation16 + $0x60] sm:$0xf]  ;;  %v3695_v61 = vld [vmem:[#allocation16 + $0x64] sm:$0xf] }
 0x4a9   : > { %v2472_v1 = vsel %vm1063_vm13, %v2464_v5, %v2471_v14  ;;  %3876 = vrot.lane.b32.xlu2 %v3875_v45, %s4338_s22  ;;  %v3567_v36 = vor.u32 %v3697_v48, %v3564_v4  ;;  %v3696_v5 = vld [vmem:[#allocation16 + $0x64] sm:$0xf0]  ;;  %v3556_v39 = vld [vmem:[#allocation16 + $0x68] sm:$0xf0]  ;;  %v3694_v10 = vld [vmem:[#allocation16 + $0x54] sm:$0xf0] }
 0x4aa   : > { %3881 = vrot.lane.b32.xlu1 %v3880_v12, %s4336_s18  ;;  %v3870_v16 = vpack.i.bf16 %v2472_v1, %v2418_v20  ;;  %v3555_v6 = vor.u32 %v3696_v5, %v3554_v54  ;;  %v3559_v38 = vor.u32 %v3695_v61, %v3556_v39  ;;  %v3693_v14 = vld [vmem:[#allocation16 + $0x54] sm:$0xf]  ;;  %v3547_v12 = vor.u32 %v3694_v10, %v3546_v8  ;;  %v3548_v45 = vld [vmem:[#allocation16 + $0x58] sm:$0xf0]  ;;  %v3538_v20 = vld [vmem:[#allocation16 + $0x40] sm:$0xf] }
 0x4ab   : > { %2581 = vmatpush.bf16.msrb.mxu1 %v3678_v37  ;;  %2759 = vmatpush.bf16.msra.mxu3 %v3567_v36  ;;  %v3692_v1 = vld [vmem:[#allocation16 + $0x44] sm:$0xf0]  ;;  %v3690_v26 = vld [vmem:[#allocation16 + $0x34] sm:$0xf0]  ;;  %v3689_v37 = vld [vmem:[#allocation16 + $0x34] sm:$0xf] }
 0x4ac   : > { %3871 = vrot.lane.b32.xlu0 %v3870_v16, %s4337_s15  ;;  %2746 = vmatpush.bf16.msrb.mxu2 %v3555_v6  ;;  %v3539_v16 = vor.u32 %v3692_v1, %v3538_v20  ;;  %v3891_v5 = vld [vmem:[%s5406_s14] ss:$0 sm:$0xff] }
 0x4ad   : > { %v3892_v8 = vld [vmem:[%s5407_s27] ss:$0 sm:$0xff] }
 0x4af   : > { %2582 = vmatpush.bf16.msrb.mxu1 %v3677_v27  ;;  %2760 = vmatpush.bf16.msra.mxu3 %v3559_v38  ;;  %v3531_v27 = vor.u32 %v3690_v26, %v3530_v22 }
 0x4b0   : > { %2747 = vmatpush.bf16.msrb.mxu2 %v3547_v12 }
 0x4b3   : > { %2583 = vmatpush.bf16.msrb.mxu1 %v3676_v29  ;;  %v3532_v29 = vld [vmem:[#allocation16 + $0x38] sm:$0xf0] }
 0x4b4   : > { %2748 = vmatpush.bf16.msrb.mxu2 %v3539_v16 }
 0x4b7   : > { %2584 = vmatpush.bf16.msrb.mxu1 %v3675_v33  ;;  %v3522_v33 = vld [vmem:[#allocation16 + $0x20] sm:$0xf] }
 0x4b8   : > { %2749 = vmatpush.bf16.msrb.mxu2 %v3531_v27 }
 0x503   : > { %v3877_v34 = vpop.permute.xlu2 %3876 }
 0x504   : > { %v3879_v41 = vunpack.i.h.bf16 %v3877_v34  ;;  %v3878_v31 = vunpack.i.l.bf16 %v3877_v34  ;;  %v3688_v34 = vld [vmem:[#allocation16 + $0x24] sm:$0xf0] }
 0x51c   : > { %v3882_v35 = vpop.permute.xlu1 %3881 }
 0x51d   : > { %v3884_v53 = vunpack.i.h.bf16 %v3882_v35  ;;  %v3883_v42 = vunpack.i.l.bf16 %v3882_v35 }
 0x51e   : > { %v3872_v40 = vpop.permute.xlu0 %3871 }
 0x51f   : > { %v3874_v32 = vunpack.i.h.bf16 %v3872_v40  ;;  %v3873_v15 = vunpack.i.l.bf16 %v3872_v40  ;;  %v3535_v40 = vor.u32 %v3689_v37, %v3532_v29 }
 0x521   : > { %v2501_v47 = vsel %vm1942_vm15, %v2416_v62, %v3873_v15  ;;  %v2502_v24 = vsel %vm1942_vm15, %v2470_v30, %v3874_v32  ;;  %v3551_v62 = vor.u32 %v3693_v14, %v3548_v45  ;;  %v3691_v30 = vld [vmem:[#allocation16 + $0x44] sm:$0xf]  ;;  %v3524_v15 = vld [vmem:[#allocation16 + $0x28] sm:$0xf0] }
 0x522   : > { %v2504_v49 = vsel %vm2503_vm1, %v2501_v47, %v3878_v31  ;;  %v2505_v18 = vsel %vm2503_vm1, %v2502_v24, %v3879_v41  ;;  %v3543_v19 = vor.u32 %v3691_v30, %v3540_v17  ;;  %v3687_v32 = vld [vmem:[#allocation16 + $0x24] sm:$0xf]  ;;  %v3523_v31 = vor.u32 %v3688_v34, %v3522_v33  ;;  %v3686_v47 = vld [vmem:[#allocation16 + $0x14] sm:$0xf0] }
 0x523   : > { %v2507_v46 = vsel %vm2506_vm2, %v2504_v49, %v3883_v42  ;;  %v2508_v63 = vsel %vm2506_vm2, %v2505_v18, %v3884_v53  ;;  %2761 = vmatpush.bf16.msra.mxu3 %v3551_v62  ;;  %v3527_v53 = vor.u32 %v3687_v32, %v3524_v15  ;;  %v3514_v42 = vld [vmem:[#allocation16 + $0x10] sm:$0xf]  ;;  %v3685_v49 = vld [vmem:[#allocation16 + $0x14] sm:$0xf]  ;;  %v3516_v18 = vld [vmem:[#allocation16 + $0x18] sm:$0xf0] }
 0x524   : > { %v2509_v7 = vpack.c.bf16 %v2508_v63, %v2507_v46  ;;  %2750 = vmatpush.bf16.msrb.mxu2 %v3523_v31  ;;  %v3515_v46 = vor.u32 %v3686_v47, %v3514_v42  ;;  %v3519_v63 = vor.u32 %v3685_v49, %v3516_v18  ;;  %v3706_v18 = vld [vmem:[#allocation18 + $0x38] sm:$0xff] }
 0x525   : > { %3082 = vmatpush.bf16.msrb.mxu0 %v3706_v18 }
 0x526   : > { %2585 = vmatmul.bf16.vlgmr.msrb.gmra.mxu1 %v2509_v7  ;;  %v3506_v7 = vld [vmem:[#allocation16] sm:$0xf] }
 0x527   : > { %2762 = vmatpush.bf16.msra.mxu3 %v3543_v19 }
 0x528   : > { %2751 = vmatpush.bf16.msrb.mxu2 %v3515_v46  ;;  %v3714_v46 = vld [vmem:[#allocation18 + $0x78] sm:$0xff] }
 0x529   : > { %3096 = vmatpush.bf16.msra.mxu1 %v3714_v46 }
 0x52b   : > { %2763 = vmatpush.bf16.msra.mxu3 %v3535_v40 }
 0x52f   : > { %2764 = vmatpush.bf16.msra.mxu3 %v3527_v53 }
 0x533   : > { %2765 = vmatpush.bf16.msra.mxu3 %v3519_v63 }
 0x5a3   : > { %v2586_v21 = vpop.f32.mrf.mxu1 }
 0x5a4   : > { %v2587_v59 = vadd.f32 %v3890_v25, %v2586_v21  ;;  %v3683_v21 = vld [vmem:[#allocation16 + $0x4] sm:$0xf] }
 0x5a6   : > { %v5138_v43 = vadd.f32 %v3948_v44, %v2587_v59  ;;  %v3508_v59 = vld [vmem:[#allocation16 + $0x8] sm:$0xf0] }
 0x5a8   : > { %2593 = vadd.xlane.f32.xlu0 %v5138_v43 }
 0x5ab   : > { %v2588_v50 = vpop.f32.mrf.mxu1 }
 0x5ac   : > { %v2589_v51 = vadd.f32 %v3890_v25, %v2588_v50  ;;  %v3684_v25 = vld [vmem:[#allocation16 + $0x4] sm:$0xf0] }
 0x5ae   : > { %v5142_v56 = vadd.f32 %v3949_v52, %v2589_v51  ;;  %v3507_v51 = vor.u32 %v3684_v25, %v3506_v7  ;;  %v3511_v52 = vor.u32 %v3683_v21, %v3508_v59 }
 0x5b0   : > { %2595 = vadd.xlane.f32.xlu2 %v5142_v56  ;;  %2752 = vmatpush.bf16.msrb.mxu2 %v3507_v51  ;;  %v3705_v51 = vld [vmem:[#allocation18 + $0x30] sm:$0xff] }
 0x5b1   : > { %2766 = vmatpush.bf16.msra.mxu3 %v3511_v52  ;;  %v3713_v52 = vld [vmem:[#allocation18 + $0x70] sm:$0xff]  ;;  %3083 = vmatpush.bf16.msrb.mxu0 %v3705_v51 }
 0x5b2   : > { %3097 = vmatpush.bf16.msra.mxu1 %v3713_v52 }
 0x61b   : > { %v2594_v57 = vpop.xlane.xlu0 %2593 }
 0x61c   : > { %v2597_v28 = vmul.f32 %v2594_v57, %v4632_v11 }
 0x61e   : > { %v5147_v23 = vsub.f32 %v5138_v43, %v2597_v28 }
 0x620   : > { %v2601_v58 = vmul.f32 %v5147_v23, %v5147_v23 }
 0x622   : > { %2603 = vadd.xlane.f32.xlu1 %v2601_v58 }
 0x623   : > { %v2596_v60 = vpop.xlane.xlu2 %2595 }
 0x624   : > { %v2598_v0 = vmul.f32 %v2596_v60, %v4632_v11 }
 0x626   : > { %v5153_v55 = vsub.f32 %v5142_v56, %v2598_v0 }
 0x628   : > { %v2602_v9 = vmul.f32 %v5153_v55, %v5153_v55 }
 0x62a   : > { %2605 = vadd.xlane.f32.xlu0 %v2602_v9 }
 0x695   : > { %v2604_v35 = vpop.xlane.xlu1 %2603 }
 0x696   : > { %v2607_v41 = vmul.f32 %v2604_v35, %v4632_v11 }
 0x698   : > { %v2609_v24 = vadd.f32 1e-05, %v2607_v41 }
 0x69a   : > { %3936 = vrsqrt.f32 %v2609_v24  ;;  %vm2617_vm4 = vweird.f32 %v2609_v24 }
 0x69d   : > { %v2606_v44 = vpop.xlane.xlu0 %2605 }
 0x69e   : > { %v2608_v50 = vmul.f32 %v2606_v44, %v4632_v11 }
 0x6a0   : > { %v3937_v57 = vpop.eup %3936  ;;  %v2610_v28 = vadd.f32 1e-05, %v2608_v50 }
 0x6a1   : > { %v2612_v58 = vmul.f32 %v3937_v57, %v2609_v24  ;;  %vm2618_vm3 = vweird.f32 %v3937_v57 }
 0x6a2   : > { %3938 = vrsqrt.f32 %v2610_v28  ;;  %vm2619_vm5 = vmor %vm2617_vm4, %vm2618_vm3  ;;  %vm2627_vm7 = vweird.f32 %v2610_v28 }
 0x6a3   : > { %v2613_v60 = vmul.f32 %v3937_v57, %v2612_v58 }
 0x6a5   : > { %v2614_v0 = vmul.f32 0.5, %v2613_v60 }
 0x6a7   : > { %v2615_v9 = vsub.f32 1.5, %v2614_v0 }
 0x6a8   : > { %v3939_v2 = vpop.eup %3938 }
 0x6a9   : > { %v2616_v13 = vmul.f32 %v3937_v57, %v2615_v9  ;;  %v2622_v48 = vmul.f32 %v3939_v2, %v2610_v28  ;;  %vm2628_vm6 = vweird.f32 %v3939_v2 }
 0x6aa   : > { %vm2629_vm8 = vmor %vm2627_vm7, %vm2628_vm6 }
 0x6ab   : > { %v2623_v3 = vmul.f32 %v3939_v2, %v2622_v48  ;;  %v2620_v11 = vsel %vm2619_vm5, %v3937_v57, %v2616_v13 }
 0x6ac   : > { %v2631_v54 = vmul.f32 %v2620_v11, %v5147_v23  ;;  %v782_v23 = vld [vmem:[%s5408_s1] sm:$0x3] }
 0x6ad   : > { %v2624_v4 = vmul.f32 0.5, %v2623_v3  ;;  %v2661_v62 = vperm.slane %v782_v23, 0  ;;  %v2662_v20 = vperm.slane %v782_v23, 1 }
 0x6ae   : > { %v2636_v38 = vmul.f32 %v3891_v5, %v2631_v54 }
 0x6af   : > { %v2625_v36 = vsub.f32 1.5, %v2624_v4 }
 0x6b0   : > { %v2641_v14 = vadd.f32 %v3892_v8, %v2636_v38 }
 0x6b1   : > { %v2626_v61 = vmul.f32 %v3939_v2, %v2625_v36 }
 0x6b3   : > { %v2630_v6 = vsel %vm2629_vm8, %v3939_v2, %v2626_v61  ;;  %v3712_v61 = vld [vmem:[#allocation18 + $0x68] sm:$0xff] }
 0x6b4   : > { %v2632_v39 = vmul.f32 %v2630_v6, %v5153_v55  ;;  %3098 = vmatpush.bf16.msra.mxu1 %v3712_v61 }
 0x6b6   : > { %v2637_v10 = vmul.f32 %v3891_v5, %v2632_v39  ;;  %v3704_v5 = vld [vmem:[#allocation18 + $0x28] sm:$0xff] }
 0x6b7   : > { %3084 = vmatpush.bf16.msrb.mxu0 %v3704_v5 }
 0x6b8   : > { %v2642_v12 = vadd.f32 %v3892_v8, %v2637_v10 }
 0x6ba   : > { %v2643_v45 = vpack.c.bf16 %v2642_v12, %v2641_v14 }
 0x6bc   : > { %2753 = vmatmul.bf16.vlgmr.msrb.gmra.mxu2 %v2643_v45  ;;  %2767 = vmatmul.bf16.vlgmr.msra.gmra.mxu3 %v2643_v45 }
 0x73f   : > { %v2754_v1 = vpop.f32.mrf.mxu2  ;;  %v2768_v30 = vpop.f32.mrf.mxu3 }
 0x740   : > { %v5170_v55 = vadd.f32 %v2754_v1, %v2661_v62  ;;  %v5172_v16 = vadd.f32 %v2768_v30, %v2662_v20  ;;  %v3703_v1 = vld [vmem:[#allocation18 + $0x20] sm:$0xff] }
 0x741   : > { %v3711_v30 = vld [vmem:[#allocation18 + $0x60] sm:$0xff]  ;;  %3085 = vmatpush.bf16.msrb.mxu0 %v3703_v1 }
 0x742   : > { %v5175_v17 = vmul.f32 0.70710677, %v5170_v55  ;;  %v5178_v19 = vmul.f32 0.70710677, %v5172_v16  ;;  %3099 = vmatpush.bf16.msra.mxu1 %v3711_v30 }
 0x744   : > { %v2781_v22 = vmul.f32 %v5175_v17, %v5175_v17  ;;  %v2821_v26 = vmul.f32 %v5178_v19, %v5178_v19 }
 0x746   : > { %v5184_v37 = vmin.f32 %v2781_v22, 16.0  ;;  %v5186_v27 = vmin.f32 %v2821_v26, 16.0 }
 0x747   : > { %v2756_v29 = vpop.f32.mrf.mxu2  ;;  %v2770_v33 = vpop.f32.mrf.mxu3 }
 0x748   : > { %v2783_v34 = vmul.f32 2.1237322e-06, %v5184_v37  ;;  %v2794_v35 = vmul.f32 3.8918573e-05, %v5184_v37  ;;  %v5190_v40 = vadd.f32 %v2756_v29, %v2661_v62  ;;  %v2834_v32 = vmul.f32 3.8918573e-05, %v5186_v27 }
 0x749   : > { %v5193_v15 = vadd.f32 %v2770_v33, %v2662_v20  ;;  %v2823_v24 = vmul.f32 2.1237322e-06, %v5186_v27 }
 0x74a   : > { %v2784_v41 = vadd.f32 0.00028619796, %v2783_v34  ;;  %v2795_v31 = vadd.f32 0.001143296, %v2794_v35  ;;  %v2835_v53 = vadd.f32 0.001143296, %v2834_v32 }
 0x74b   : > { %v5196_v42 = vmul.f32 0.70710677, %v5190_v40  ;;  %v5201_v49 = vmul.f32 0.70710677, %v5193_v15  ;;  %v2824_v28 = vadd.f32 0.00028619796, %v2823_v24 }
 0x74c   : > { %v2796_v47 = vmul.f32 %v2795_v31, %v5184_v37  ;;  %v2836_v63 = vmul.f32 %v2835_v53, %v5186_v27  ;;  %v2785_v25 = vmul.f32 %v2784_v41, %v5184_v37  ;;  %v3702_v32 = vld [vmem:[#allocation18 + $0x18] sm:$0xff] }
 0x74d   : > { %v2861_v7 = vmul.f32 %v5196_v42, %v5196_v42  ;;  %v2901_v59 = vmul.f32 %v5201_v49, %v5201_v49  ;;  %v2825_v36 = vmul.f32 %v2824_v28, %v5186_v27  ;;  %3086 = vmatpush.bf16.msrb.mxu0 %v3702_v32 }
 0x74e   : > { %v2797_v21 = vadd.f32 0.014752088, %v2796_v47  ;;  %v2837_v44 = vadd.f32 0.014752088, %v2836_v63  ;;  %v2786_v2 = vadd.f32 0.0036580483, %v2785_v25 }
 0x74f   : > { %v5209_v50 = vmin.f32 %v2861_v7, 16.0  ;;  %v5212_v58 = vmin.f32 %v2901_v59, 16.0  ;;  %v2826_v62 = vadd.f32 0.0036580483, %v2825_v36  ;;  %v3710_v47 = vld [vmem:[#allocation18 + $0x58] sm:$0xff]  ;;  %v3701_v7 = vld [vmem:[#allocation18 + $0x10] sm:$0xff] }
 0x750   : > { %v2798_v57 = vmul.f32 %v2797_v21, %v5184_v37  ;;  %v2838_v60 = vmul.f32 %v2837_v44, %v5186_v27  ;;  %v2787_v10 = vmul.f32 %v2786_v2, %v5184_v37  ;;  %3100 = vmatpush.bf16.msra.mxu1 %v3710_v47  ;;  %v3709_v25 = vld [vmem:[#allocation18 + $0x50] sm:$0xff]  ;;  %v3708_v2 = vld [vmem:[#allocation18 + $0x48] sm:$0xff] }
 0x751   : > { %v2863_v0 = vmul.f32 2.1237322e-06, %v5209_v50  ;;  %v2874_v9 = vmul.f32 3.8918573e-05, %v5209_v50  ;;  %v2903_v54 = vmul.f32 2.1237322e-06, %v5212_v58  ;;  %v2827_v18 = vmul.f32 %v2826_v62, %v5186_v27  ;;  %3087 = vmatpush.bf16.msrb.mxu0 %v3701_v7 }
 0x752   : > { %v2799_v13 = vadd.f32 0.112945676, %v2798_v57  ;;  %v2839_v48 = vadd.f32 0.112945676, %v2838_v60  ;;  %v2914_v8 = vmul.f32 3.8918573e-05, %v5212_v58 }
 0x753   : > { %v2864_v3 = vadd.f32 0.00028619796, %v2863_v0  ;;  %v2875_v11 = vadd.f32 0.001143296, %v2874_v9  ;;  %v2904_v29 = vadd.f32 0.00028619796, %v2903_v54 }
 0x754   : > { %v2800_v4 = vmul.f32 %v2799_v13, %v5184_v37  ;;  %v2840_v6 = vmul.f32 %v2839_v48, %v5186_v27  ;;  %v2915_v33 = vadd.f32 0.001143296, %v2914_v8  ;;  %v2788_v34 = vadd.f32 0.05243302, %v2787_v10  ;;  %3101 = vmatpush.bf16.msra.mxu1 %v3709_v25  ;;  %v3700_v9 = vld [vmem:[#allocation18 + $0x8] sm:$0xff]  ;;  %v3699_v8 = vld [vmem:[#allocation18] sm:$0xff] }
 0x755   : > { %v2865_v39 = vmul.f32 %v2864_v3, %v5209_v50  ;;  %v2876_v38 = vmul.f32 %v2875_v11, %v5209_v50  ;;  %v2905_v46 = vmul.f32 %v2904_v29, %v5212_v58  ;;  %v2828_v51 = vadd.f32 0.05243302, %v2827_v18  ;;  %3088 = vmatpush.bf16.msrb.mxu0 %v3700_v9  ;;  %v3707_v10 = vld [vmem:[#allocation18 + $0x40] sm:$0xff] }
 0x756   : > { %v2801_v14 = vadd.f32 0.4994258, %v2800_v4  ;;  %v2841_v12 = vadd.f32 0.4994258, %v2840_v6  ;;  %v2916_v53 = vmul.f32 %v2915_v33, %v5212_v58  ;;  %v2789_v63 = vmul.f32 %v2788_v34, %v5184_v37 }
 0x757   : > { %v2877_v45 = vadd.f32 0.014752088, %v2876_v38  ;;  %v2866_v20 = vadd.f32 0.0036580483, %v2865_v39  ;;  %v2906_v57 = vadd.f32 0.0036580483, %v2905_v46  ;;  %v2829_v5 = vmul.f32 %v2828_v51, %v5186_v27 }
 0x758   : > { %v2802_v23 = vmul.f32 %v2801_v14, %v5184_v37  ;;  %v2842_v22 = vmul.f32 %v2841_v12, %v5186_v27  ;;  %v2917_v59 = vadd.f32 0.014752088, %v2916_v53  ;;  %v2790_v0 = vadd.f32 0.18741608, %v2789_v63  ;;  %3102 = vmatpush.bf16.msra.mxu1 %v3708_v2 }
 0x759   : > { %v2878_v26 = vmul.f32 %v2877_v45, %v5209_v50  ;;  %v2867_v24 = vmul.f32 %v2866_v20, %v5209_v50  ;;  %v2907_v6 = vmul.f32 %v2906_v57, %v5212_v58  ;;  %v2830_v1 = vadd.f32 0.18741608, %v2829_v5  ;;  %3089 = vmatpush.bf16.msrb.mxu0 %v3699_v8 }
 0x75a   : > { %v5228_v35 = vadd.f32 1.0, %v2802_v23  ;;  %v5230_v41 = vadd.f32 1.0, %v2842_v22  ;;  %v2918_v28 = vmul.f32 %v2917_v59, %v5212_v58  ;;  %v2791_v39 = vmul.f32 %v2790_v0, %v5184_v37 }
 0x75b   : > { %v2879_v31 = vadd.f32 0.112945676, %v2878_v26  ;;  %v2868_v44 = vadd.f32 0.05243302, %v2867_v24  ;;  %v2908_v30 = vadd.f32 0.05243302, %v2907_v6 }
 0x75c   : > { %3940 = vrcp.f32 %v5228_v35  ;;  %v2919_v36 = vadd.f32 0.112945676, %v2918_v28  ;;  %v2815_v20 = vand.u32 2147483648, %v5228_v35  ;;  %v2792_v22 = vadd.f32 1.1283791, %v2791_v39  ;;  %3103 = vmatpush.bf16.msra.mxu1 %v3707_v10 }
 0x75d   : > { %3942 = vrcp.f32 %v5230_v41  ;;  %v2880_v21 = vmul.f32 %v2879_v31, %v5209_v50  ;;  %v2869_v4 = vmul.f32 %v2868_v44, %v5209_v50  ;;  %vm2809_vm10 = vweird.f32 %v5228_v35 }
 0x75e   : > { %v2920_v38 = vmul.f32 %v2919_v36, %v5212_v58  ;;  %v2813_v37 = vand.u32 2147483647, %v5228_v35  ;;  %v2816_v53 = vor.u32 1.1754944e-38, %v2815_v20  ;;  %v2909_v47 = vmul.f32 %v2908_v30, %v5212_v58 }
 0x75f   : > { %v2881_v52 = vadd.f32 0.4994258, %v2880_v21  ;;  %v2870_v45 = vadd.f32 0.18741608, %v2869_v4  ;;  %v2793_v24 = vmul.f32 %v2792_v22, %v5175_v17  ;;  %v2855_v7 = vand.u32 2147483648, %v5230_v41 }
 0x760   : > { %v2921_v23 = vadd.f32 0.4994258, %v2920_v38  ;;  %vm2814_vm12 = vcmp.eq.f32.partialorder %v2813_v37, 8.507059e+37  ;;  %vm2849_vm14 = vweird.f32 %v5230_v41  ;;  %v2910_v44 = vadd.f32 0.18741608, %v2909_v47 }
 0x761   : > { %v2882_v3 = vmul.f32 %v2881_v52, %v5209_v50  ;;  %v2871_v34 = vmul.f32 %v2870_v45, %v5209_v50  ;;  %v2853_v50 = vand.u32 2147483647, %v5230_v41 }
 0x762   : > { %v3941_v60 = vpop.eup %3940  ;;  %v2922_v26 = vmul.f32 %v2921_v23, %v5212_v58 }
 0x763   : > { %v5241_v13 = vpop.eup %3942  ;;  %v2805_v48 = vmul.f32 %v3941_v60, %v5228_v35  ;;  %v2883_v61 = vadd.f32 1.0, %v2882_v3  ;;  %vm2810_vm9 = vweird.f32 %v3941_v60  ;;  %v2831_v35 = vmul.f32 %v2830_v1, %v5186_v27 }
 0x764   : > { %v2845_v11 = vmul.f32 %v5241_v13, %v5230_v41  ;;  %vm2811_vm11 = vmor %vm2809_vm10, %vm2810_vm9  ;;  %v5258_v32 = vadd.f32 1.0, %v2922_v26  ;;  %vm2850_vm13 = vweird.f32 %v5241_v13  ;;  %v2872_v25 = vadd.f32 1.1283791, %v2871_v34 }
 0x765   : > { %v2806_v54 = vsub.f32 1.0, %v2805_v48  ;;  %3944 = vrcp.f32 %v2883_v61  ;;  %v2893_v17 = vand.u32 2147483647, %v2883_v61  ;;  %v2895_v59 = vand.u32 2147483648, %v2883_v61  ;;  %vm5269_vm15 = vmor %vm2849_vm14, %vm2850_vm13 }
 0x766   : > { %v2846_v12 = vsub.f32 1.0, %v2845_v11  ;;  %3946 = vrcp.f32 %v5258_v32  ;;  %v2832_v57 = vadd.f32 1.1283791, %v2831_v35  ;;  %vm2854_vm1 = vcmp.eq.f32.partialorder %v2853_v50, 8.507059e+37 }
 0x767   : > { %v2807_v14 = vmul.f32 %v3941_v60, %v2806_v54  ;;  %vm2889_vm2 = vweird.f32 %v2883_v61  ;;  %v2873_v9 = vmul.f32 %v2872_v25, %v5196_v42  ;;  %vm2894_vm4 = vcmp.eq.f32.partialorder %v2893_v17, 8.507059e+37 }
 0x768   : > { %v2847_v29 = vmul.f32 %v5241_v13, %v2846_v12  ;;  %v2896_v2 = vor.u32 1.1754944e-38, %v2895_v59  ;;  %v2911_v48 = vmul.f32 %v2910_v44, %v5212_v58  ;;  %v2833_v54 = vmul.f32 %v2832_v57, %v5178_v19 }
 0x769   : > { %v2808_v62 = vadd.f32 %v3941_v60, %v2807_v14  ;;  %v2933_v38 = vand.u32 2147483647, %v5258_v32  ;;  %v2935_v42 = vand.u32 2147483648, %v5258_v32  ;;  %v2773_v58 = vmul.f32 0.5, %v5170_v55 }
 0x76a   : > { %v2848_v63 = vadd.f32 %v5241_v13, %v2847_v29  ;;  %v2775_v12 = vmul.f32 0.5, %v5190_v40  ;;  %vm2929_vm6 = vweird.f32 %v5258_v32  ;;  %v2774_v40 = vmul.f32 0.5, %v5172_v16 }
 0x76b   : > { %v2812_v33 = vsel %vm2811_vm11, %v3941_v60, %v2808_v62  ;;  %v3945_v31 = vpop.eup %3944  ;;  %v2856_v60 = vor.u32 1.1754944e-38, %v2855_v7  ;;  %v2936_v20 = vor.u32 1.1754944e-38, %v2935_v42  ;;  %vm2934_vm8 = vcmp.eq.f32.partialorder %v2933_v38, 8.507059e+37 }
 0x76c   : > { %v2885_v18 = vmul.f32 %v3945_v31, %v2883_v61  ;;  %v2817_v46 = vsel %vm2814_vm12, %v2816_v53, %v2812_v33  ;;  %vm2890_vm0 = vweird.f32 %v3945_v31  ;;  %v2852_v28 = vsel %vm5269_vm15, %v5241_v13, %v2848_v63  ;;  %v3947_v41 = vpop.eup %3946 }
 0x76d   : > { %v2818_v27 = vmul.f32 %v2817_v46, %v2793_v24  ;;  %vm2891_vm3 = vmor %vm2889_vm2, %vm2890_vm0  ;;  %v2857_v11 = vsel %vm2854_vm1, %v2856_v60, %v2852_v28  ;;  %v2925_v36 = vmul.f32 %v3947_v41, %v5258_v32  ;;  %v2912_v61 = vadd.f32 1.1283791, %v2911_v48  ;;  %v3893_v24 = vld [vmem:[%s5412_s30] ss:$0 sm:$0xff] }
 0x76e   : > { %v2886_v21 = vsub.f32 1.0, %v2885_v18  ;;  %v2858_v39 = vmul.f32 %v2857_v11, %v2833_v54  ;;  %vm2930_vm5 = vweird.f32 %v3947_v41  ;;  %v2776_v34 = vmul.f32 0.5, %v5193_v15 }
 0x76f   : > { %v3568_v3 = vclamps-f32 %v2818_v27, 1.0  ;;  %v2926_v6 = vsub.f32 1.0, %v2925_v36  ;;  %v2913_v62 = vmul.f32 %v2912_v61, %v5201_v49  ;;  %vm2931_vm7 = vmor %vm2929_vm6, %vm2930_vm5 }
 0x770   : > { %v2887_v52 = vmul.f32 %v3945_v31, %v2886_v21  ;;  %v3569_v19 = vclamps-f32 %v2858_v39, 1.0 }
 0x771   : > { %v2941_v8 = vadd.f32 1.0, %v3568_v3  ;;  %v2927_v14 = vmul.f32 %v3947_v41, %v2926_v6 }
 0x772   : > { %v2888_v0 = vadd.f32 %v3945_v31, %v2887_v52  ;;  %v2942_v33 = vadd.f32 1.0, %v3569_v19 }
 0x773   : > { %v2928_v23 = vadd.f32 %v3947_v41, %v2927_v14  ;;  %v2945_v1 = vmul.f32 %v2941_v8, %v2773_v58 }
 0x774   : > { %v2892_v4 = vsel %vm2891_vm3, %v3945_v31, %v2888_v0  ;;  %v2946_v49 = vmul.f32 %v2942_v33, %v2774_v40 }
 0x775   : > { %v2897_v13 = vsel %vm2894_vm4, %v2896_v2, %v2892_v4  ;;  %v2932_v22 = vsel %vm2931_vm7, %v3947_v41, %v2928_v23 }
 0x776   : > { %v2898_v5 = vmul.f32 %v2897_v13, %v2873_v9  ;;  %v2937_v37 = vsel %vm2934_vm8, %v2936_v20, %v2932_v22 }
 0x777   : > { %v2938_v29 = vmul.f32 %v2937_v37, %v2913_v62 }
 0x778   : > { %v3570_v10 = vclamps-f32 %v2898_v5, 1.0 }
 0x779   : > { %v3571_v55 = vclamps-f32 %v2938_v29, 1.0 }
 0x77a   : > { %v2943_v45 = vadd.f32 1.0, %v3570_v10 }
 0x77b   : > { %v2944_v32 = vadd.f32 1.0, %v3571_v55 }
 0x77c   : > { %v2947_v30 = vmul.f32 %v2943_v45, %v2775_v12 }
 0x77d   : > { %v2948_v31 = vmul.f32 %v2944_v32, %v2776_v34 }
 0x77e   : > { %v2949_v26 = vpack.c.bf16 %v2947_v30, %v2945_v1 }
 0x77f   : > { %v2950_v53 = vpack.c.bf16 %v2948_v31, %v2946_v49 }
 0x780   : > { %3090 = vmatmul.bf16.vlgmr.msrb.gmra.mxu0 %v2949_v26 }
 0x781   : > { %3104 = vmatmul.bf16.vlgmr.msra.gmra.mxu1 %v2950_v53 }
 0x7fd   : > { %v3091_v47 = vpop.f32.mrf.mxu0 }
 0x7fe   : > { %v3092_v35 = vadd.f32 %v3893_v24, %v3091_v47  ;;  %v3105_v18 = vpop.f32.mrf.mxu1 }
 0x800   : > { %v3106_v46 = vadd.f32 %v3105_v18, %v3092_v35 }
 0x802   : > { %v3110_v16 = vadd.f32 %v3106_v46, %v5138_v43 }
 0x804   : > { %3112 = vst [vmem:[%s768_s26] sm:$0xff] %v3110_v16 }
 0x805   : > { %v3093_v63 = vpop.f32.mrf.mxu0 }
 0x806   : > { %v3094_v15 = vadd.f32 %v3893_v24, %v3093_v63  ;;  %v3107_v50 = vpop.f32.mrf.mxu1 }
 0x808   : > { %v3108_v7 = vadd.f32 %v3107_v50, %v3094_v15 }
 0x80a   : > { %v3111_v25 = vadd.f32 %v3108_v7, %v5142_v56 }
 0x80c   : > { %3113 = vst [vmem:[%s768_s26 + $0x8] sm:$0xff] %v3111_v25 }
 0x80d   : > { %4247 = shalt.err (!%p4244_p13)
}
 0x80e   : > { %s4341_s10 = smov 128   ;;  %s4342_s2 = smov 8  }
 0x80f   : > { %3752 = dma.vmem_to_hbm [thread:$0]  (%p4563_p5), %s3130_s25, 256, %s3132_s4, %s3115_s6, %s4341_s10, %s4341_s10, %s4342_s2  }
 0x810 PF: > { %s5415_s1 = sld [smem:[#allocation27_spill]]  ;;  %p3784_p0 = pnand %p3318_p4, %p4571_p7 }
 0x812   : > { %p3785_p2 = pneg %p3784_p0 }
 0x816   : > { %s3146_s23 = sand.u32 1, %s5415_s1  }
 0x817   : > { %s3147_s13 = scalar_lea.sflag [#allocation6], %s3146_s23 }
 0x818   : > { %4297 = dma.done.wait (%p3785_p2), %s3147_s13, 256  }
 0x819   : > { %4299 = vsyncadd (%p3785_p2), %s3147_s13, 4294967040  ;;  %s40_s19 = sadd.s32 1, %s4322_s19   ;;  %s5417_s30 = sld [smem:[#allocation28_spill]] }
 0x81a   : > { %p37_p6 = scmp.ge.s32.totalorder %s40_s19, 4   ;;  %s5418_s29 = sld [smem:[#allocation32_spill]] }
 0x81b   : > { %s5419_s21 = sld [smem:[#allocation30_spill]]  ;;  %s5420_s27 = smov %s4306_s28 }
 0x81d   :  { %39 = sbr.rel (!%p37_p6) target bundleno = 27 (0x1b), region = 182 }
 0x81f   : > { %s5421_s28 = smov %s5417_s30  ;;  %s5422_s30 = smov %s4318_s0 }
 0x821   : > { %s5423_s0 = smov %s5419_s21 }
 0x822   :  { %3153 = vsyncpa [#allocation5], 1 }
 0x823   :  { %3155 = vsyncpa [#allocation5 + $0x1], 1 }
 0x824   :  { %3156 = vsyncpa [#allocation8], 1 }
 0x825   :  { %3158 = vsyncpa [#allocation8 + $0x1], 1 }
 0x826   :  { %3159 = vsyncpa [#allocation11], 1 }
 0x827   :  { %3160 = vsyncpa [#allocation14], 1 }
 0x828   :  { %3161 = vsyncpa [#allocation17], 1 }
 0x829   :  { %3162 = vsyncpa [#allocation6], 1 }
 0x82a   :  { %3164 = vsyncpa [#allocation6 + $0x1], 1 }

</bundles_post_ra>
